<compile_context>
chip_gen: v5e
topology: v5e:2x2
jax: 0.10.0
libtpu: 0.0.40
codegen_flags: <defaults>
</compile_context>

<pallas_src>
import numpy as np
import jax
import jax.numpy as jnp
from jax.experimental import pallas as pl
from jax.experimental.pallas import tpu as pltpu


OUT_PAD = 128  # fc3's 9 outputs zero-padded to one full lane tile


def _round_up(x, m):
    return (x + m - 1) // m * m


# ---------------------------------------------------------------------------
# Kernel 1: conv1/conv2/conv3 + per-chunk max, pooled output as accumulator.
# ---------------------------------------------------------------------------
def stn3d_conv_kernel(x_ref,                  # (bblk, nblk, C)   bf16
                      w1_ref, b1_ref,         # (C, 64)   bf16, (1, 64)  f32
                      w2_ref, b2_ref,         # (64, 128) bf16, (1, 128) f32
                      w3_ref,                 # (128, 1024) bf16  (bias deferred)
                      pooled_ref):            # (bblk, 1024) f32  running max
    nk = pl.program_id(1)
    bblk, nblk, c = x_ref.shape

    # Flatten the batch block so every conv matmul sees bblk*nblk rows.
    x = x_ref[...].reshape(bblk * nblk, c)

    h = jnp.dot(x, w1_ref[...], preferred_element_type=jnp.float32) + b1_ref[...]
    h = jnp.maximum(h, 0.0).astype(jnp.bfloat16)
    h = jnp.dot(h, w2_ref[...], preferred_element_type=jnp.float32) + b2_ref[...]
    h = jnp.maximum(h, 0.0).astype(jnp.bfloat16)
    # conv3 WITHOUT bias/ReLU: deferred past the max-pool (both commute with max).
    s = jnp.dot(h, w3_ref[...], preferred_element_type=jnp.float32)

    pooled = jnp.max(s.reshape(bblk, nblk, 1024), axis=1)     # (bblk, 1024) f32

    @pl.when(nk == 0)
    def _():
        pooled_ref[...] = pooled

    @pl.when(nk > 0)
    def _():
        pooled_ref[...] = jnp.maximum(pooled_ref[...], pooled)


# ---------------------------------------------------------------------------
# Kernel 2: deferred conv3 bias+ReLU, then the FC head over the whole batch.
# ---------------------------------------------------------------------------
def stn3d_fc_kernel(g_ref,                    # (B_pad, 1024) f32 pooled (pre-bias)
                    b3_ref,                   # (1, 1024) f32
                    w4_ref, b4_ref,           # (1024, 512) bf16, (1, 512) f32
                    w5_ref, b5_ref,           # (512, 256)  bf16, (1, 256) f32
                    w6_ref, b6_ref,           # (256, 128)  bf16, (1, 128) f32 (iden folded)
                    out_ref):                 # (B_pad, 128) f32
    g = jnp.maximum(g_ref[...] + b3_ref[...], 0.0).astype(jnp.bfloat16)
    f = jnp.dot(g, w4_ref[...], preferred_element_type=jnp.float32) + b4_ref[...]
    f = jnp.maximum(f, 0.0).astype(jnp.bfloat16)
    f = jnp.dot(f, w5_ref[...], preferred_element_type=jnp.float32) + b5_ref[...]
    f = jnp.maximum(f, 0.0).astype(jnp.bfloat16)
    out = jnp.dot(f, w6_ref[...], preferred_element_type=jnp.float32) + b6_ref[...]
    out_ref[...] = out.astype(out_ref.dtype)


# ---------------------------------------------------------------------------
# Block-size picker: (8,128)-legal blocks, ~target_rows rows per step.
# ---------------------------------------------------------------------------
def _pick_blocks(B, N, target_rows=4096):
    B_pad = _round_up(B, 8)
    # Point chunk: multiple of 8, capped so even the minimum bblk=8 keeps
    # bblk*nblk <= target_rows (bounds the (rows, 1024) f32 conv3 activation).
    nblk_cap = max(8, (target_rows // 8) // 8 * 8)
    nblk = min(_round_up(N, 8), nblk_cap)
    N_pad = _round_up(N, nblk)
    # Batch block: largest multiple-of-8 divisor of B_pad within the row budget.
    bcap = max(8, (target_rows // nblk) // 8 * 8)
    bblk = 8
    d = 8
    while d <= min(B_pad, bcap):
        if B_pad % d == 0:
            bblk = d
        d += 8
    # Prefer >=2 batch ("parallel") steps so both v7x TensorCores get work.
    if B_pad // bblk < 2 and bblk >= 16:
        d = bblk - 8
        while d >= 8:
            if B_pad % d == 0 and d * nblk >= 128:
                bblk = d
                break
            d -= 8
    return B_pad, bblk, N_pad, nblk


# ---------------------------------------------------------------------------
# Wrapper: layout / padding / BN-fold glue + two pallas_calls.
# ---------------------------------------------------------------------------
def stn3d_forward(x_ncw, params, *, target_rows=4096):
    """x_ncw: (B, channel, N) float32, like the PyTorch module input."""
    B, C, N = x_ncw.shape
    (w1, b1, w2, b2, w3, b3, w4, b4, w5, b5, w6, b6) = params

    B_pad, bblk, N_pad, nblk = _pick_blocks(B, N, target_rows)
    grid = (B_pad // bblk, N_pad // nblk)

    # (B, N, C); pad N by REPLICATING real points (safe for max), pad B with zeros.
    x_bnc = jnp.transpose(x_ncw, (0, 2, 1))
    if N_pad > N:
        x_bnc = jnp.pad(x_bnc, ((0, 0), (0, N_pad - N), (0, 0)), mode="edge")
    if B_pad > B:
        x_bnc = jnp.pad(x_bnc, ((0, B_pad - B), (0, 0), (0, 0)))
    x_bnc = x_bnc.astype(jnp.bfloat16)

    w1b, w2b, w3b = (w.astype(jnp.bfloat16) for w in (w1, w2, w3))
    b1f, b2f = (b.astype(jnp.float32) for b in (b1, b2))

    vmem_spec = pl.BlockSpec(memory_space=pltpu.MemorySpace.VMEM)

    rows = bblk * nblk
    # Corrected VMEM estimate (lane-padded tiles).
    est_vmem = (
        2 * rows * 128 * 2                        # x tile (C padded to 128 lanes), 2 buffers, bf16
        + rows * 128 * (4 + 2)                    # conv1 act f32 + bf16 recast
        + rows * 128 * (4 + 2)                    # conv2 act f32 + bf16 recast
        + 2 * rows * 1024 * 4                     # conv3 act f32 + reshape/pool temp
        + 2 * bblk * 1024 * 4                     # pooled output block (double-buffered)
        + (C * 64 + 64 * 128 + 128 * 1024) * 2    # resident bf16 conv weights
        + 2 * 8 * 128 * 4                         # biases (sublane/lane padded f32)
    )
    vmem_limit = int(min(56 * 2**20, max(32 * 2**20, int(1.25 * est_vmem))))

    pooled = pl.pallas_call(
        stn3d_conv_kernel,
        out_shape=jax.ShapeDtypeStruct((B_pad, 1024), jnp.float32),
        grid=grid,
        in_specs=[
            pl.BlockSpec((bblk, nblk, C), lambda b, nk: (b, nk, 0)),  # x tile
            vmem_spec, vmem_spec,   # w1, b1
            vmem_spec, vmem_spec,   # w2, b2
            vmem_spec,              # w3 (bias deferred past the pool)
        ],
        out_specs=pl.BlockSpec((bblk, 1024), lambda b, nk: (b, 0)),
        compiler_params=pltpu.CompilerParams(
            dimension_semantics=("parallel", "arbitrary"),
            vmem_limit_bytes=vmem_limit,
        ),
    )(x_bnc, w1b, b1f, w2b, b2f, w3b)

    # FC head once over the whole (padded) batch: lane-dense padded fc3 output.
    w6p = jnp.pad(w6, ((0, 0), (0, OUT_PAD - w6.shape[1])))
    b6p = jnp.pad(b6, ((0, 0), (0, OUT_PAD - b6.shape[1])))
    w4b, w5b, w6b = (w.astype(jnp.bfloat16) for w in (w4, w5, w6p))
    b3f, b4f, b5f, b6f = (b.astype(jnp.float32) for b in (b3, b4, b5, b6p))

    out_flat = pl.pallas_call(
        stn3d_fc_kernel,
        out_shape=jax.ShapeDtypeStruct((B_pad, OUT_PAD), jnp.float32),
        in_specs=[vmem_spec] * 8,
        out_specs=vmem_spec,
    )(pooled, b3f, w4b, b4f, w5b, b5f, w6b, b6f)

    return out_flat[:B, :9].reshape(B, 3, 3)


# ---------------------------------------------------------------------------
# Deterministic parameter construction (eval-mode BatchNorm folded in).
# ---------------------------------------------------------------------------
def fold_bn(W, b, gamma, beta, mean, var, eps=1e-5):
    """Fold  y = gamma*(Wx+b - mean)/sqrt(var+eps) + beta  into (W', b')."""
    scale = gamma / jnp.sqrt(var + eps)
    return W * scale[None, :], (b - mean) * scale + beta


def make_params(channel, key):
    keys = jax.random.split(key, 32)
    ki = iter(keys)

    def lin(cin, cout, s=0.05):
        W = s * jax.random.normal(next(ki), (cin, cout), jnp.float32)
        b = s * jax.random.normal(next(ki), (cout,), jnp.float32)
        return W, b

    def bn(c):
        gamma = 1.0 + 0.1 * jax.random.normal(next(ki), (c,), jnp.float32)
        beta = 0.1 * jax.random.normal(next(ki), (c,), jnp.float32)
        mean = 0.1 * jax.random.normal(next(ki), (c,), jnp.float32)
        var = jax.random.uniform(next(ki), (c,), jnp.float32, 0.5, 1.5)
        return gamma, beta, mean, var

    # conv1/2/3 (kernel_size=1 -> channel matmul) with bn1/2/3 folded
    w1, b1 = fold_bn(*lin(channel, 64), *bn(64))
    w2, b2 = fold_bn(*lin(64, 128), *bn(128))
    w3, b3 = fold_bn(*lin(128, 1024), *bn(1024))
    # fc1/fc2 with bn4/bn5 folded
    w4, b4 = fold_bn(*lin(1024, 512), *bn(512))
    w5, b5 = fold_bn(*lin(512, 256), *bn(256))
    # fc3 — fold the flattened 3x3 identity into the bias
    w6, b6 = lin(256, 9)
    iden = jnp.array([1, 0, 0, 0, 1, 0, 0, 0, 1], jnp.float32)
    b6 = b6 + iden

    # biases as (1, K) rows for in-kernel broadcast
    return (w1, b1[None, :], w2, b2[None, :], w3, b3[None, :],
            w4, b4[None, :], w5, b5[None, :], w6, b6[None, :])


# ---------------------------------------------------------------------------
# Pure-JAX reference (same folded params, same bf16 casts) for correctness.
# ---------------------------------------------------------------------------
def stn3d_reference(x_ncw, params):
    (w1, b1, w2, b2, w3, b3, w4, b4, w5, b5, w6, b6) = params
    x = jnp.transpose(x_ncw, (0, 2, 1)).astype(jnp.bfloat16)   # (B, N, C)

    def mm(a, w):
        return jnp.dot(a, w.astype(jnp.bfloat16), preferred_element_type=jnp.float32)

    h = jnp.maximum(mm(x, w1) + b1, 0.0).astype(jnp.bfloat16)
    h = jnp.maximum(mm(h, w2) + b2, 0.0).astype(jnp.bfloat16)
    h = jnp.maximum(mm(h, w3) + b3, 0.0)
    g = jnp.max(h, axis=1).astype(jnp.bfloat16)                 # (B, 1024)
    f = jnp.maximum(mm(g, w4) + b4[0], 0.0).astype(jnp.bfloat16)
    f = jnp.maximum(mm(f, w5) + b5[0], 0.0).astype(jnp.bfloat16)
    out = mm(f, w6) + b6[0]
    return out.reshape(-1, 3, 3)


if __name__ == "__main__":
    key = jax.random.PRNGKey(0)
    k_param, k_x = jax.random.split(key)

    B, channel, N = 2, 3, 16                    # STN3d on xyz point clouds
    params = make_params(channel, k_param)
    x = jax.random.normal(k_x, (B, channel, N), jnp.float32)

    out = jax.block_until_ready(stn3d_forward(x, params))
    ref = jax.block_until_ready(stn3d_reference(x, params))

    assert out.shape == (B, 3, 3)
    np.testing.assert_allclose(np.asarray(out), np.asarray(ref), rtol=1e-2, atol=1e-2)

    print("KERNEL_OK")
</pallas_src>

<mosaic_0001>
module attributes {stable_mosaic.version = 11 : i64} {
  func.func @stn3d_conv_kernel(%arg0: i32, %arg1: i32, %arg2: memref<8x16x3xbf16, #tpu.memory_space<vmem>>, %arg3: memref<3x64xbf16, #tpu.memory_space<vmem>>, %arg4: memref<1x64xf32, #tpu.memory_space<vmem>>, %arg5: memref<64x128xbf16, #tpu.memory_space<vmem>>, %arg6: memref<1x128xf32, #tpu.memory_space<vmem>>, %arg7: memref<128x1024xbf16, #tpu.memory_space<vmem>>, %arg8: memref<8x1024xf32, #tpu.memory_space<vmem>>) attributes {dimension_semantics = [#tpu.dimension_semantics<parallel>, #tpu.dimension_semantics<arbitrary>], iteration_bounds = array<i64: 1, 1>, scalar_prefetch = 0 : i64, scratch_operands = 0 : i64, tpu.core_type = #tpu.core_type<tc>, window_params = [{transform_indices = @transform_0, window_bounds = array<i64: 8, 16, 3>}, {pipeline_mode = #tpu.pipeline_mode<synchronous>, transform_indices = @transform_1, window_bounds = array<i64: 3, 64>}, {pipeline_mode = #tpu.pipeline_mode<synchronous>, transform_indices = @transform_2, window_bounds = array<i64: 1, 64>}, {pipeline_mode = #tpu.pipeline_mode<synchronous>, transform_indices = @transform_3, window_bounds = array<i64: 64, 128>}, {pipeline_mode = #tpu.pipeline_mode<synchronous>, transform_indices = @transform_4, window_bounds = array<i64: 1, 128>}, {pipeline_mode = #tpu.pipeline_mode<synchronous>, transform_indices = @transform_5, window_bounds = array<i64: 128, 1024>}, {transform_indices = @transform_6, window_bounds = array<i64: 8, 1024>}]} {
    %c0 = arith.constant 0 : index
    %c0_0 = arith.constant 0 : index
    %c0_1 = arith.constant 0 : index
    %0 = vector.load %arg2[%c0, %c0_0, %c0_1] : memref<8x16x3xbf16, #tpu.memory_space<vmem>>, vector<8x16x3xbf16>
    %1 = vector.shape_cast %0 : vector<8x16x3xbf16> to vector<128x3xbf16>
    %c0_2 = arith.constant 0 : index
    %c0_3 = arith.constant 0 : index
    %2 = vector.load %arg3[%c0_2, %c0_3] : memref<3x64xbf16, #tpu.memory_space<vmem>>, vector<3x64xbf16>
    %cst = arith.constant dense<0.000000e+00> : vector<128x64xf32>
    %3 = tpu.matmul %1, %2, %cst {dimension_numbers = #tpu.dot_dimension_numbers<[1], [0], [0], [1], [0, 0, 1, 1], [], []>} : vector<128x3xbf16>, vector<3x64xbf16>, vector<128x64xf32> -> vector<128x64xf32>
    %c0_4 = arith.constant 0 : index
    %c0_5 = arith.constant 0 : index
    %4 = vector.load %arg4[%c0_4, %c0_5] : memref<1x64xf32, #tpu.memory_space<vmem>>, vector<1x64xf32>
    %5 = vector.broadcast %4 : vector<1x64xf32> to vector<128x64xf32>
    %6 = arith.addf %3, %5 : vector<128x64xf32>
    %cst_6 = arith.constant 0.000000e+00 : f32
    %7 = vector.broadcast %cst_6 : f32 to vector<128x64xf32>
    %8 = arith.maximumf %6, %7 : vector<128x64xf32>
    %9 = arith.truncf %8 : vector<128x64xf32> to vector<128x64xbf16>
    %c0_7 = arith.constant 0 : index
    %c0_8 = arith.constant 0 : index
    %10 = vector.load %arg5[%c0_7, %c0_8] : memref<64x128xbf16, #tpu.memory_space<vmem>>, vector<64x128xbf16>
    %cst_9 = arith.constant dense<0.000000e+00> : vector<128x128xf32>
    %11 = tpu.matmul %9, %10, %cst_9 {dimension_numbers = #tpu.dot_dimension_numbers<[1], [0], [0], [1], [0, 0, 1, 1], [], []>} : vector<128x64xbf16>, vector<64x128xbf16>, vector<128x128xf32> -> vector<128x128xf32>
    %c0_10 = arith.constant 0 : index
    %c0_11 = arith.constant 0 : index
    %12 = vector.load %arg6[%c0_10, %c0_11] : memref<1x128xf32, #tpu.memory_space<vmem>>, vector<1x128xf32>
    %13 = vector.broadcast %12 : vector<1x128xf32> to vector<128x128xf32>
    %14 = arith.addf %11, %13 : vector<128x128xf32>
    %cst_12 = arith.constant 0.000000e+00 : f32
    %15 = vector.broadcast %cst_12 : f32 to vector<128x128xf32>
    %16 = arith.maximumf %14, %15 : vector<128x128xf32>
    %17 = arith.truncf %16 : vector<128x128xf32> to vector<128x128xbf16>
    %c0_13 = arith.constant 0 : index
    %c0_14 = arith.constant 0 : index
    %18 = vector.load %arg7[%c0_13, %c0_14] : memref<128x1024xbf16, #tpu.memory_space<vmem>>, vector<128x1024xbf16>
    %cst_15 = arith.constant dense<0.000000e+00> : vector<128x1024xf32>
    %19 = tpu.matmul %17, %18, %cst_15 {dimension_numbers = #tpu.dot_dimension_numbers<[1], [0], [0], [1], [0, 0, 1, 1], [], []>} : vector<128x128xbf16>, vector<128x1024xbf16>, vector<128x1024xf32> -> vector<128x1024xf32>
    %20 = vector.shape_cast %19 : vector<128x1024xf32> to vector<8x16x1024xf32>
    %cst_16 = arith.constant dense<0xFF800000> : vector<8x1024xf32>
    %21 = vector.multi_reduction <maximumf>, %20, %cst_16 [1] : vector<8x16x1024xf32> to vector<8x1024xf32>
    %c0_i32 = arith.constant 0 : i32
    %22 = arith.cmpi eq, %arg1, %c0_i32 : i32
    %23 = arith.extui %22 : i1 to i32
    %c0_i32_17 = arith.constant 0 : i32
    %24 = arith.cmpi ne, %23, %c0_i32_17 : i32
    scf.if %24 {
      %c0_20 = arith.constant 0 : index
      %c0_21 = arith.constant 0 : index
      %28 = vector.load %arg8[%c0_20, %c0_21] : memref<8x1024xf32, #tpu.memory_space<vmem>>, vector<8x1024xf32>
      tpu.vector_store %arg8[%c0_20, %c0_21], %21 {strides = array<i32>} : memref<8x1024xf32, #tpu.memory_space<vmem>>, vector<8x1024xf32>,
    } else {
    }
    %c0_i32_18 = arith.constant 0 : i32
    %25 = arith.cmpi sgt, %arg1, %c0_i32_18 : i32
    %26 = arith.extui %25 : i1 to i32
    %c0_i32_19 = arith.constant 0 : i32
    %27 = arith.cmpi ne, %26, %c0_i32_19 : i32
    scf.if %27 {
      %c0_20 = arith.constant 0 : index
      %c0_21 = arith.constant 0 : index
      %28 = vector.load %arg8[%c0_20, %c0_21] : memref<8x1024xf32, #tpu.memory_space<vmem>>, vector<8x1024xf32>
      %29 = arith.maximumf %28, %21 : vector<8x1024xf32>
      %c0_22 = arith.constant 0 : index
      %c0_23 = arith.constant 0 : index
      %30 = vector.load %arg8[%c0_22, %c0_23] : memref<8x1024xf32, #tpu.memory_space<vmem>>, vector<8x1024xf32>
      tpu.vector_store %arg8[%c0_22, %c0_23], %29 {strides = array<i32>} : memref<8x1024xf32, #tpu.memory_space<vmem>>, vector<8x1024xf32>,
    } else {
    }
    return
  }
  func.func @transform_0(%arg0: i32, %arg1: i32) -> (i32, i32, i32) {
    %c0_i32 = arith.constant 0 : i32
    %c0_i32_0 = arith.constant 0 : i32
    return %arg0, %arg1, %c0_i32 : i32, i32, i32
  }
  func.func @transform_1(%arg0: i32, %arg1: i32) -> (i32, i32) {
    %c0_i32 = arith.constant 0 : i32
    %c0_i32_0 = arith.constant 0 : i32
    %c0_i32_1 = arith.constant 0 : i32
    return %c0_i32, %c0_i32_0 : i32, i32
  }
  func.func @transform_2(%arg0: i32, %arg1: i32) -> (i32, i32) {
    %c0_i32 = arith.constant 0 : i32
    %c0_i32_0 = arith.constant 0 : i32
    %c0_i32_1 = arith.constant 0 : i32
    return %c0_i32, %c0_i32_0 : i32, i32
  }
  func.func @transform_3(%arg0: i32, %arg1: i32) -> (i32, i32) {
    %c0_i32 = arith.constant 0 : i32
    %c0_i32_0 = arith.constant 0 : i32
    %c0_i32_1 = arith.constant 0 : i32
    return %c0_i32, %c0_i32_0 : i32, i32
  }
  func.func @transform_4(%arg0: i32, %arg1: i32) -> (i32, i32) {
    %c0_i32 = arith.constant 0 : i32
    %c0_i32_0 = arith.constant 0 : i32
    %c0_i32_1 = arith.constant 0 : i32
    return %c0_i32, %c0_i32_0 : i32, i32
  }
  func.func @transform_5(%arg0: i32, %arg1: i32) -> (i32, i32) {
    %c0_i32 = arith.constant 0 : i32
    %c0_i32_0 = arith.constant 0 : i32
    %c0_i32_1 = arith.constant 0 : i32
    return %c0_i32, %c0_i32_0 : i32, i32
  }
  func.func @transform_6(%arg0: i32, %arg1: i32) -> (i32, i32) {
    %c0_i32 = arith.constant 0 : i32
    %c0_i32_0 = arith.constant 0 : i32
    return %arg0, %c0_i32 : i32, i32
  }
}

</mosaic_0001>

<bundles_post_ra>
// kernel: tpu_custom_call.1
= control target key start
LH: loop header
LB: loop body
LE: loop exit
PB: predicated region body
PF: predicated region fallthrough
CT: control target
= control target key end

     0   :  { %11 = vsyncpa [#allocation3], 0  ;;  %s2700_s0 = inlined_call_operand.vmem [shape: bf16[8,16,3], index: 0, kind: input, shape index: {}]   ;;  %s2701_s1 = inlined_call_operand.vmem [shape: bf16[3,64], index: 1, kind: input, shape index: {}]   ;;  %s2702_s2 = inlined_call_operand.vmem [shape: f32[1,64], index: 2, kind: input, shape index: {}]   ;;  %s2703_s3 = inlined_call_operand.vmem [shape: bf16[64,128], index: 3, kind: input, shape index: {}]   ;;  %s2704_s4 = inlined_call_operand.vmem [shape: f32[1,128], index: 4, kind: input, shape index: {}]   ;;  %s2705_s5 = inlined_call_operand.hbm [shape: bf16[128,1024], index: 5, kind: input, shape index: {}]   ;;  %s2706_s6 = inlined_call_operand.hbm [shape: f32[8,1024], index: 6, kind: output, shape index: {}]  }
   0x1   :  { %12 = vsyncpa [#allocation4], 0  ;;  %s27_s23 = sshll.u32 %s2705_s5, 4  ;;  %s2360_s24 = smov [#allocation2]   ;;  %s28_s23 = int_to_ptr.hbm [resolvable:$true] %s27_s23 }
   0x2   :  { %s29_s25 = sshll.u32 %s2360_s24, 4  ;;  %s2361_s26 = smov 512   ;;  %s30_s25 = int_to_ptr.vmem [resolvable:$true] %s29_s25 }
   0x3   :  { %s2362_s27 = smov 32  }
   0x4   :  { %35 = dma.hbm_to_vmem [thread:$0]  %s28_s23, 8192, %s30_s25, [#allocation3], %s2361_s26, %s2361_s26, %s2362_s27  }
   0x5   :  { %2356 = dma.done.wait [#allocation3], 8192  }
   0x6   :  { %2357 = vsyncadd [#allocation3], 4294959104  ;;  %vm127_vm0 = vcmask 1040384   ;;  %vm128_vm1 = vcmask 1041408   ;;  %v2363_v0 = vmov 65535   ;;  %v2212_v5 = vld [vmem:[%s2700_s0] sm:$0xff] }
   0x7   :  { %v129_v1 = vsel %vm127_vm0, 4294967295, %v2363_v0  ;;  %v57_v3 = vld [vmem:[%s2701_s1] sm:$0x3]  ;;  %vm102_vm2 = vcmask 23552   ;;  %v2213_v6 = vld [vmem:[%s2700_s0 + $0x8] sm:$0xff]  ;;  %v2214_v8 = vld [vmem:[%s2700_s0 + $0x10] sm:$0xff] }
   0x8   :  { %v130_v2 = vsel %vm128_vm1, %v129_v1, 0  ;;  %v2217_v7 = vld [vmem:[%s2700_s0 + $0x28] sm:$0xff]  ;;  %v2218_v9 = vld [vmem:[%s2700_s0 + $0x30] sm:$0xff]  ;;  %v2215_v10 = vld [vmem:[%s2700_s0 + $0x18] sm:$0xff]  ;;  %vm243_vm3 = vcmask 523264   ;;  %vm1633_vm4 = vcmask 1041409  }
   0x9   :  { %v132_v4 = vand.u32 %v130_v2, %v57_v3  ;;  %v2219_v11 = vld [vmem:[%s2700_s0 + $0x38] sm:$0xff]  ;;  %v2216_v12 = vld [vmem:[%s2700_s0 + $0x20] sm:$0xff]  ;;  %v2222_v14 = vld [vmem:[%s2703_s3 + $0x10] sm:$0xff]  ;;  %vm1635_vm5 = vcmask 1042434   ;;  %vm1637_vm6 = vcmask 1043459   ;;  %vm1639_vm7 = vcmask 1044484  }
   0xa   :  { %v2223_v13 = vld [vmem:[%s2703_s3 + $0x18] sm:$0xff]  ;;  %v2221_v15 = vld [vmem:[%s2703_s3 + $0x8] sm:$0xff]  ;;  %v2220_v16 = vld [vmem:[%s2703_s3] sm:$0xff]  ;;  %vm1641_vm8 = vcmask 1045509   ;;  %vm1643_vm9 = vcmask 1046534   ;;  %vm1645_vm10 = vcmask 1047559  }
   0xb   :  { %141 = vmatpush.bf16.msra.mxu0 %v132_v4  ;;  %2288 = vmatpush.bf16.msra.mxu3 %v132_v4  ;;  %v2453_v18 = vld [vmem:[%s2702_s2] ss:$0 sm:$0xff]  ;;  %v2190_v48 = vld [vmem:[#allocation2 + $0x1c8] sm:$0xf]  ;;  %v2280_v50 = vld [vmem:[#allocation2 + $0x1c4] sm:$0xf] }
   0xc   :  { %272 = vmatpush.bf16.msra.mxu1 %v2223_v13  ;;  %2289 = vmatpush.bf16.msra.mxu2 %v2223_v13  ;;  %v2285_v49 = vld [vmem:[#allocation2 + $0x1e4] sm:$0xf0]  ;;  %v2184_v53 = vld [vmem:[#allocation2 + $0x1e0] sm:$0xf0]  ;;  %v2281_v57 = vld [vmem:[#allocation2 + $0x1cc] sm:$0xf] }
   0xd   :  { %v2191_v52 = vor.u32 %v2285_v49, %v2190_v48  ;;  %v2158_v54 = vld [vmem:[#allocation2 + $0x188] sm:$0xf]  ;;  %v2187_v56 = vor.u32 %v2280_v50, %v2184_v53  ;;  %v2192_v58 = vld [vmem:[#allocation2 + $0x1e8] sm:$0xf0]  ;;  %v2272_v59 = vld [vmem:[#allocation2 + $0x184] sm:$0xf] }
   0xe   :  { %1924 = vmatmul.msk.bf16.vlgmr.msra.gmra.mxu0 %vm102_vm2, %v2212_v5  ;;  %1929 = vmatmul.msk.bf16.vlgmr.msra.gmra.mxu3 %vm102_vm2, %v2217_v7  ;;  %v2277_v55 = vld [vmem:[#allocation2 + $0x1a4] sm:$0xf0]  ;;  %v2195_v63 = vor.u32 %v2281_v57, %v2192_v58  ;;  %v2152_v0 = vld [vmem:[#allocation2 + $0x1a0] sm:$0xf0]  ;;  %v2273_v7 = vld [vmem:[#allocation2 + $0x18c] sm:$0xf] }
   0xf   :  { %823 = vmatpush.bf16.msrb.mxu0 %v2191_v52  ;;  %v2159_v62 = vor.u32 %v2277_v55, %v2158_v54  ;;  %v2126_v1 = vld [vmem:[#allocation2 + $0x148] sm:$0xf]  ;;  %774 = vmatpush.bf16.msrb.mxu3 %v2187_v56  ;;  %v2155_v3 = vor.u32 %v2272_v59, %v2152_v0  ;;  %v2264_v5 = vld [vmem:[#allocation2 + $0x144] sm:$0xf]  ;;  %v2260_v48 = vld [vmem:[#allocation2 + $0x11c] sm:$0xf0] }
  0x10   :  { %273 = vmatpush.bf16.msra.mxu1 %v2222_v14  ;;  %2290 = vmatpush.bf16.msra.mxu2 %v2222_v14  ;;  %v2269_v4 = vld [vmem:[#allocation2 + $0x164] sm:$0xf0]  ;;  %v2240_v54 = vld [vmem:[#allocation2 + $0x84] sm:$0xf]  ;;  %s1882_s7 = sshll.u32 %s2706_s6, 4  ;;  %s1883_s7 = int_to_ptr.hbm [resolvable:$true] %s1882_s7 }
  0x11   :  { %v2127_v13 = vor.u32 %v2269_v4, %v2126_v1  ;;  %v2024_v55 = vld [vmem:[#allocation2 + $0xa0] sm:$0xf0]  ;;  %v2054_v4 = vld [vmem:[#allocation2 + $0xc0] sm:$0xf] }
  0x12   :  { %v2027_v59 = vor.u32 %v2240_v54, %v2024_v55  ;;  %v2206_v54 = vld [vmem:[#allocation2 + $0x1d8] sm:$0xf] }
  0x13   :  { %824 = vmatpush.bf16.msrb.mxu0 %v2159_v62  ;;  %775 = vmatpush.bf16.msrb.mxu3 %v2155_v3  ;;  %v2287_v55 = vld [vmem:[#allocation2 + $0x1f4] sm:$0xf0] }
  0x14   :  { %274 = vmatpush.bf16.msra.mxu1 %v2221_v15  ;;  %2291 = vmatpush.bf16.msra.mxu2 %v2221_v15  ;;  %v2094_v15 = vld [vmem:[#allocation2 + $0x108] sm:$0xf] }
  0x17   :  { %825 = vmatpush.bf16.msrb.mxu0 %v2127_v13 }
  0x18   :  { %275 = vmatpush.bf16.msra.mxu1 %v2220_v16  ;;  %2292 = vmatpush.bf16.msra.mxu2 %v2220_v16 }
  0x1c   :  { %872 = vmatpush.bf16.msrb.mxu1 %v2195_v63 }
  0x1e   :  { %1925 = vmatmul.msk.bf16.gmra.mxu0 %vm102_vm2, %v2213_v6  ;;  %1930 = vmatmul.msk.bf16.gmra.mxu3 %vm102_vm2, %v2218_v9  ;;  %v2120_v6 = vld [vmem:[#allocation2 + $0x160] sm:$0xf0]  ;;  %v2182_v9 = vld [vmem:[#allocation2 + $0x1c0] sm:$0xf] }
  0x2e   :  { %1926 = vmatmul.msk.bf16.gmra.mxu0 %vm102_vm2, %v2214_v8  ;;  %1931 = vmatmul.msk.bf16.gmra.mxu3 %vm102_vm2, %v2219_v11  ;;  %v2160_v8 = vld [vmem:[#allocation2 + $0x1a8] sm:$0xf0] }
  0x2f   :  { %v2163_v11 = vor.u32 %v2273_v7, %v2160_v8  ;;  %v2064_v8 = vld [vmem:[#allocation2 + $0xe8] sm:$0xf0] }
  0x31   :  { %873 = vmatpush.bf16.msrb.mxu1 %v2163_v11  ;;  %v2244_v11 = vld [vmem:[#allocation2 + $0x9c] sm:$0xf0] }
  0x3e   :  { %1927 = vmatmul.msk.bf16.gmra.mxu0 %vm102_vm2, %v2215_v10 }
  0x4e   :  { %1928 = vmatmul.msk.bf16.gmra.mxu0 %vm102_vm2, %v2216_v12  ;;  %v2284_v12 = vld [vmem:[#allocation2 + $0x1dc] sm:$0xf0] }
  0x4f   :  { %v2183_v14 = vor.u32 %v2284_v12, %v2182_v9  ;;  %v2030_v12 = vld [vmem:[#allocation2 + $0x88] sm:$0xf] }
  0x51   :  { %725 = vmatpush.bf16.msrb.mxu2 %v2183_v14  ;;  %v2241_v14 = vld [vmem:[#allocation2 + $0x8c] sm:$0xf] }
  0x8b   :  { %v143_v17 = vpop.f32.mrf.mxu0 }
  0x8c   :  { %v144_v19 = vadd.f32 %v2453_v18, %v143_v17 }
  0x8e   :  { %v183_v22 = vmax.f32 %v144_v19, 0.0  ;;  %v2123_v19 = vor.u32 %v2264_v5, %v2120_v6  ;;  %v2252_v5 = vld [vmem:[#allocation2 + $0xdc] sm:$0xf0]  ;;  %v2249_v6 = vld [vmem:[#allocation2 + $0xcc] sm:$0xf] }
  0x8f   :  { %v2055_v7 = vor.u32 %v2252_v5, %v2054_v4  ;;  %v2067_v9 = vor.u32 %v2249_v6, %v2064_v8  ;;  %v2136_v4 = vld [vmem:[#allocation2 + $0x170] sm:$0xf0]  ;;  %v2283_v6 = vld [vmem:[#allocation2 + $0x1dc] sm:$0xf] }
  0x90   :  { %776 = vmatpush.bf16.msrb.mxu3 %v2123_v19 }
  0x91   :  { %v168_v29 = vpop.f32.mrf.mxu3 }
  0x92   :  { %v169_v33 = vadd.f32 %v2453_v18, %v168_v29  ;;  %v2268_v29 = vld [vmem:[#allocation2 + $0x15c] sm:$0xf0] }
  0x93   :  { %v145_v20 = vpop.f32.mrf.mxu0 }
  0x94   :  { %v146_v21 = vadd.f32 %v2453_v18, %v145_v20  ;;  %v193_v36 = vmax.f32 %v169_v33, 0.0  ;;  %v2261_v20 = vld [vmem:[#allocation2 + $0x124] sm:$0xf0] }
  0x95   :  { %v2095_v33 = vor.u32 %v2261_v20, %v2094_v15  ;;  %v2032_v15 = vld [vmem:[#allocation2 + $0xa8] sm:$0xf0] }
  0x96   :  { %v184_v23 = vmax.f32 %v146_v21, 0.0  ;;  %v2150_v21 = vld [vmem:[#allocation2 + $0x180] sm:$0xf]  ;;  %v2035_v20 = vor.u32 %v2241_v14, %v2032_v15 }
  0x97   :  { %826 = vmatpush.bf16.msrb.mxu0 %v2095_v33  ;;  %v1958_v33 = vld [vmem:[#allocation2] sm:$0xf] }
  0x98   :  { %v199_v24 = vpack.c.bf16 %v184_v23, %v183_v22  ;;  %v2276_v22 = vld [vmem:[#allocation2 + $0x19c] sm:$0xf0] }
  0x99   :  { %v170_v35 = vpop.f32.mrf.mxu3 }
  0x9a   :  { %1948 = vmatmul.msk.bf16.vlgmr.msra.gmra.mxu1 %vm243_vm3, %v199_v24  ;;  %v171_v37 = vadd.f32 %v2453_v18, %v170_v35  ;;  %v2256_v24 = vld [vmem:[#allocation2 + $0x104] sm:$0xf]  ;;  %v2257_v35 = vld [vmem:[#allocation2 + $0x10c] sm:$0xf] }
  0x9b   :  { %v148_v25 = vpop.f32.mrf.mxu0 }
  0x9c   :  { %v149_v26 = vadd.f32 %v2453_v18, %v148_v25  ;;  %v194_v38 = vmax.f32 %v171_v37, 0.0  ;;  %v2088_v25 = vld [vmem:[#allocation2 + $0x120] sm:$0xf0] }
  0x9e   :  { %v185_v30 = vmax.f32 %v149_v26, 0.0  ;;  %v204_v40 = vpack.c.bf16 %v194_v38, %v193_v36  ;;  %v2151_v26 = vor.u32 %v2276_v22, %v2150_v21  ;;  %v2096_v36 = vld [vmem:[#allocation2 + $0x128] sm:$0xf0]  ;;  %v1990_v22 = vld [vmem:[#allocation2 + $0x40] sm:$0xf] }
  0xa0   :  { %1953 = vmatmul.msk.bf16.vlgmr.msra.gmra.mxu2 %vm243_vm3, %v204_v40  ;;  %v2248_v40 = vld [vmem:[#allocation2 + $0xc4] sm:$0xf] }
  0xa1   :  { %v173_v43 = vpop.f32.mrf.mxu3  ;;  %726 = vmatpush.bf16.msrb.mxu2 %v2151_v26  ;;  %v2237_v26 = vld [vmem:[#allocation2 + $0x64] sm:$0xf0] }
  0xa2   :  { %v174_v47 = vadd.f32 %v2453_v18, %v173_v43  ;;  %v2099_v43 = vor.u32 %v2257_v35, %v2096_v36  ;;  %v2228_v35 = vld [vmem:[#allocation2 + $0x1c] sm:$0xf0]  ;;  %v1966_v36 = vld [vmem:[#allocation2 + $0x8] sm:$0xf] }
  0xa3   :  { %v150_v27 = vpop.f32.mrf.mxu0 }
  0xa4   :  { %v151_v28 = vadd.f32 %v2453_v18, %v150_v27  ;;  %v195_v60 = vmax.f32 %v174_v47, 0.0  ;;  %v2118_v27 = vld [vmem:[#allocation2 + $0x140] sm:$0xf] }
  0xa5   :  { %v2086_v47 = vld [vmem:[#allocation2 + $0x100] sm:$0xf] }
  0xa6   :  { %v186_v31 = vmax.f32 %v151_v28, 0.0  ;;  %v2087_v53 = vor.u32 %v2260_v48, %v2086_v47  ;;  %v2198_v47 = vld [vmem:[#allocation2 + $0x1d0] sm:$0xf] }
  0xa7   :  { %v2286_v48 = vld [vmem:[#allocation2 + $0x1ec] sm:$0xf0] }
  0xa8   :  { %v200_v32 = vpack.c.bf16 %v186_v31, %v185_v30  ;;  %v2265_v30 = vld [vmem:[#allocation2 + $0x14c] sm:$0xf] }
  0xa9   :  { %v175_v61 = vpop.f32.mrf.mxu3  ;;  %v2128_v31 = vld [vmem:[#allocation2 + $0x168] sm:$0xf0] }
  0xaa   :  { %1949 = vmatmul.msk.bf16.gmra.mxu1 %vm243_vm3, %v200_v32  ;;  %v176_v2 = vadd.f32 %v2453_v18, %v175_v61 }
  0xab   :  { %v153_v34 = vpop.f32.mrf.mxu0 }
  0xac   :  { %v154_v39 = vadd.f32 %v2453_v18, %v153_v34  ;;  %v196_v10 = vmax.f32 %v176_v2, 0.0  ;;  %v2131_v34 = vor.u32 %v2265_v30, %v2128_v31  ;;  %v2224_v31 = vld [vmem:[#allocation2 + $0x4] sm:$0xf] }
  0xae   :  { %v187_v44 = vmax.f32 %v154_v39, 0.0  ;;  %v205_v17 = vpack.c.bf16 %v196_v10, %v195_v60  ;;  %v2091_v39 = vor.u32 %v2256_v24, %v2088_v25  ;;  %874 = vmatpush.bf16.msrb.mxu1 %v2131_v34  ;;  %v2022_v10 = vld [vmem:[#allocation2 + $0x80] sm:$0xf]  ;;  %v1998_v24 = vld [vmem:[#allocation2 + $0x48] sm:$0xf] }
  0xaf   :  { %v2023_v13 = vor.u32 %v2244_v11, %v2022_v10  ;;  %v2279_v10 = vld [vmem:[#allocation2 + $0x1b4] sm:$0xf0] }
  0xb0   :  { %1954 = vmatmul.msk.bf16.gmra.mxu2 %vm243_vm3, %v205_v17  ;;  %777 = vmatpush.bf16.msrb.mxu3 %v2091_v39  ;;  %v1992_v17 = vld [vmem:[#allocation2 + $0x60] sm:$0xf0] }
  0xb1   :  { %v178_v32 = vpop.f32.mrf.mxu3 }
  0xb2   :  { %v179_v50 = vadd.f32 %v2453_v18, %v178_v32  ;;  %875 = vmatpush.bf16.msrb.mxu1 %v2099_v43  ;;  %v1960_v32 = vld [vmem:[#allocation2 + $0x20] sm:$0xf0]  ;;  %v2282_v43 = vld [vmem:[#allocation2 + $0x1d4] sm:$0xf] }
  0xb3   :  { %v155_v41 = vpop.f32.mrf.mxu0  ;;  %v1963_v34 = vor.u32 %v2224_v31, %v1960_v32 }
  0xb4   :  { %v156_v42 = vadd.f32 %v2453_v18, %v155_v41  ;;  %v2056_v41 = vld [vmem:[#allocation2 + $0xe0] sm:$0xf0]  ;;  %v197_v57 = vmax.f32 %v179_v50, 0.0  ;;  %v2199_v50 = vor.u32 %v2286_v48, %v2198_v47  ;;  %v2110_v47 = vld [vmem:[#allocation2 + $0x118] sm:$0xf] }
  0xb5   :  { %v2263_v48 = vld [vmem:[#allocation2 + $0x134] sm:$0xf0] }
  0xb6   :  { %v188_v45 = vmax.f32 %v156_v42, 0.0  ;;  %v2119_v42 = vor.u32 %v2268_v29, %v2118_v27  ;;  %876 = vmatpush.bf16.msrb.mxu1 %v2067_v9  ;;  %v2233_v27 = vld [vmem:[#allocation2 + $0x4c] sm:$0xf]  ;;  %v1999_v29 = vor.u32 %v2237_v26, %v1998_v24  ;;  %v2174_v9 = vld [vmem:[#allocation2 + $0x198] sm:$0xf] }
  0xb7   :  { %v2175_v11 = vor.u32 %v2279_v10, %v2174_v9  ;;  %v2176_v26 = vld [vmem:[#allocation2 + $0x1b8] sm:$0xf0] }
  0xb8   :  { %v201_v46 = vpack.c.bf16 %v188_v45, %v187_v44  ;;  %v2062_v44 = vld [vmem:[#allocation2 + $0xc8] sm:$0xf]  ;;  %727 = vmatpush.bf16.msrb.mxu2 %v2119_v42 }
  0xb9   :  { %v2253_v45 = vld [vmem:[#allocation2 + $0xe4] sm:$0xf0]  ;;  %v180_v56 = vpop.f32.mrf.mxu3 }
  0xba   :  { %1950 = vmatmul.msk.bf16.gmra.mxu1 %vm243_vm3, %v201_v46  ;;  %v2063_v49 = vor.u32 %v2253_v45, %v2062_v44  ;;  %v181_v58 = vadd.f32 %v2453_v18, %v180_v56  ;;  %v2200_v44 = vld [vmem:[#allocation2 + $0x1f0] sm:$0xf0]  ;;  %v2207_v56 = vor.u32 %v2287_v55, %v2206_v54 }
  0xbb   :  { %v158_v51 = vpop.f32.mrf.mxu0  ;;  %877 = vmatpush.bf16.msrb.mxu1 %v2035_v20  ;;  %v2203_v45 = vor.u32 %v2282_v43, %v2200_v44  ;;  %v2270_v20 = vld [vmem:[#allocation2 + $0x16c] sm:$0xf0]  ;;  %v2267_v43 = vld [vmem:[#allocation2 + $0x15c] sm:$0xf] }
  0xbc   :  { %v159_v16 = vadd.f32 %v2453_v18, %v158_v51  ;;  %v2059_v51 = vor.u32 %v2248_v40, %v2056_v41  ;;  %827 = vmatpush.bf16.msrb.mxu0 %v2063_v49  ;;  %728 = vmatpush.bf16.msrb.mxu2 %v2087_v53  ;;  %v198_v60 = vmax.f32 %v181_v58, 0.0  ;;  %v2225_v40 = vld [vmem:[#allocation2 + $0xc] sm:$0xf]  ;;  %v2274_v49 = vld [vmem:[#allocation2 + $0x194] sm:$0xf] }
  0xbd   :  { %v1968_v41 = vld [vmem:[#allocation2 + $0x28] sm:$0xf0]  ;;  %v2482_v53 = vld [vmem:[%s2704_s4] ss:$0 sm:$0xff]  ;;  %v2144_v44 = vld [vmem:[#allocation2 + $0x178] sm:$0xf0] }
  0xbe   :  { %v189_v37 = vmax.f32 %v159_v16, 0.0  ;;  %778 = vmatpush.bf16.msrb.mxu3 %v2059_v51  ;;  %v206_v62 = vpack.c.bf16 %v198_v60, %v197_v57  ;;  %v2232_v16 = vld [vmem:[#allocation2 + $0x44] sm:$0xf]  ;;  %v1971_v42 = vor.u32 %v2225_v40, %v1968_v41  ;;  %v2168_v51 = vld [vmem:[#allocation2 + $0x1b0] sm:$0xf0]  ;;  %s2364_s4 = smov [#allocation5]  }
  0xbf   :  { %v1995_v21 = vor.u32 %v2232_v16, %v1992_v17  ;;  %v2250_v40 = vld [vmem:[#allocation2 + $0xd4] sm:$0xf]  ;;  %s1880_s29 = sshll.u32 %s2364_s4, 4  ;;  %s1881_s29 = int_to_ptr.vmem [resolvable:$true] %s1880_s29 }
  0xc0   :  { %1955 = vmatmul.msk.bf16.gmra.mxu2 %vm243_vm3, %v206_v62 }
  0xc1   :  { %729 = vmatpush.bf16.msrb.mxu2 %v2055_v7  ;;  %v2208_v7 = vld [vmem:[#allocation2 + $0x1f8] sm:$0xf0] }
  0xc2   :  { %779 = vmatpush.bf16.msrb.mxu3 %v2027_v59  ;;  %v2492_v8 = vor.u32 %v2283_v6, %v2208_v7  ;;  %v2255_v6 = vld [vmem:[#allocation2 + $0xf4] sm:$0xf0] }
  0xc3   :  { %v160_v23 = vpop.f32.mrf.mxu0 }
  0xc4   :  { %v161_v28 = vadd.f32 %v2453_v18, %v160_v23  ;;  %v2236_v23 = vld [vmem:[#allocation2 + $0x5c] sm:$0xf0] }
  0xc5   :  { %730 = vmatpush.bf16.msrb.mxu2 %v2023_v13  ;;  %v1991_v25 = vor.u32 %v2236_v23, %v1990_v22  ;;  %v2104_v23 = vld [vmem:[#allocation2 + $0x130] sm:$0xf0] }
  0xc6   :  { %v190_v38 = vmax.f32 %v161_v28, 0.0  ;;  %780 = vmatpush.bf16.msrb.mxu3 %v1995_v21  ;;  %v2000_v28 = vld [vmem:[#allocation2 + $0x68] sm:$0xf0]  ;;  %v2258_v21 = vld [vmem:[#allocation2 + $0x114] sm:$0xf] }
  0xc7   :  { %v2003_v30 = vor.u32 %v2233_v27, %v2000_v28  ;;  %v2107_v24 = vor.u32 %v2258_v21, %v2104_v23  ;;  %v2142_v28 = vld [vmem:[#allocation2 + $0x158] sm:$0xf]  ;;  %v2008_v21 = vld [vmem:[#allocation2 + $0x70] sm:$0xf0]  ;;  %v2080_v23 = vld [vmem:[#allocation2 + $0xf8] sm:$0xf0] }
  0xc8   :  { %v202_v46 = vpack.c.bf16 %v190_v38, %v189_v37  ;;  %v2229_v37 = vld [vmem:[#allocation2 + $0x24] sm:$0xf0]  ;;  %v1959_v38 = vor.u32 %v2228_v35, %v1958_v33 }
  0xc9   :  { %731 = vmatpush.bf16.msrb.mxu2 %v1991_v25  ;;  %878 = vmatpush.bf16.msrb.mxu1 %v2003_v30  ;;  %v1967_v39 = vor.u32 %v2229_v37, %v1966_v36  ;;  %v2275_v25 = vld [vmem:[#allocation2 + $0x19c] sm:$0xf] }
  0xca   :  { %1951 = vmatmul.msk.bf16.gmra.mxu1 %vm243_vm3, %v202_v46  ;;  %781 = vmatpush.bf16.msrb.mxu3 %v1963_v34  ;;  %v2503_v27 = vor.u32 %v2275_v25, %v2176_v26  ;;  %v2046_v26 = vld [vmem:[#allocation2 + $0x98] sm:$0xf] }
  0xcb   :  { %v163_v52 = vpop.f32.mrf.mxu0 }
  0xcc   :  { %v164_v61 = vadd.f32 %v2453_v18, %v163_v52  ;;  %v2171_v52 = vor.u32 %v2274_v49, %v2168_v51  ;;  %v2111_v49 = vor.u32 %v2263_v48, %v2110_v47  ;;  %v2014_v48 = vld [vmem:[#allocation2 + $0x58] sm:$0xf] }
  0xcd   :  { %732 = vmatpush.bf16.msrb.mxu2 %v1959_v38  ;;  %879 = vmatpush.bf16.msrb.mxu1 %v1971_v42  ;;  %v2102_v38 = vld [vmem:[#allocation2 + $0x110] sm:$0xf]  ;;  %v2072_v42 = vld [vmem:[#allocation2 + $0xf0] sm:$0xf0] }
  0xce   :  { %v191_v1 = vmax.f32 %v164_v61, 0.0  ;;  %970 = vmatpush.bf16.msra.mxu3 %v2203_v45  ;;  %v2075_v45 = vor.u32 %v2250_v40, %v2072_v42  ;;  %v2226_v40 = vld [vmem:[#allocation2 + $0x14] sm:$0xf] }
  0xcf   :  { %v1976_v42 = vld [vmem:[#allocation2 + $0x30] sm:$0xf0] }
  0xd1   :  { %921 = vmatpush.bf16.msra.mxu2 %v2199_v50  ;;  %1068 = vmatpush.bf16.msra.mxu1 %v2492_v8 }
  0xd2   :  { %971 = vmatpush.bf16.msra.mxu3 %v2171_v52 }
  0xd3   :  { %v165_v63 = vpop.f32.mrf.mxu0 }
  0xd4   :  { %v166_v0 = vadd.f32 %v2453_v18, %v165_v63  ;;  %v2245_v18 = vld [vmem:[#allocation2 + $0xa4] sm:$0xf0] }
  0xd5   :  { %v2031_v19 = vor.u32 %v2245_v18, %v2030_v12  ;;  %1069 = vmatpush.bf16.msra.mxu1 %v2503_v27 }
  0xd6   :  { %v192_v2 = vmax.f32 %v166_v0, 0.0  ;;  %v2166_v0 = vld [vmem:[#allocation2 + $0x190] sm:$0xf] }
  0xd7   :  { %828 = vmatpush.bf16.msrb.mxu0 %v2031_v19  ;;  %v2134_v19 = vld [vmem:[#allocation2 + $0x150] sm:$0xf] }
  0xd8   :  { %v203_v3 = vpack.c.bf16 %v192_v2, %v191_v1  ;;  %v2278_v1 = vld [vmem:[#allocation2 + $0x1ac] sm:$0xf0]  ;;  %v2266_v2 = vld [vmem:[#allocation2 + $0x154] sm:$0xf]  ;;  %v2135_v22 = vor.u32 %v2270_v20, %v2134_v19 }
  0xd9   :  { %v2139_v5 = vor.u32 %v2266_v2, %v2136_v4  ;;  %v2112_v2 = vld [vmem:[#allocation2 + $0x138] sm:$0xf0]  ;;  %v2234_v19 = vld [vmem:[#allocation2 + $0x54] sm:$0xf] }
  0xda   :  { %1952 = vmatmul.msk.bf16.gmra.mxu1 %vm243_vm3, %v203_v3  ;;  %v2167_v3 = vor.u32 %v2278_v1, %v2166_v0  ;;  %v2040_v0 = vld [vmem:[#allocation2 + $0xb0] sm:$0xf0]  ;;  %v2259_v1 = vld [vmem:[#allocation2 + $0x11c] sm:$0xf] }
  0xdb   :  { %829 = vmatpush.bf16.msrb.mxu0 %v1999_v29  ;;  %972 = vmatpush.bf16.msra.mxu3 %v2139_v5  ;;  %v2271_v29 = vld [vmem:[#allocation2 + $0x174] sm:$0xf0]  ;;  %v2525_v4 = vor.u32 %v2259_v1, %v2112_v2 }
  0xdc   :  { %922 = vmatpush.bf16.msra.mxu2 %v2167_v3  ;;  %v2143_v30 = vor.u32 %v2271_v29, %v2142_v28  ;;  %v2078_v5 = vld [vmem:[#allocation2 + $0xd8] sm:$0xf] }
  0xdd   :  { %v2079_v7 = vor.u32 %v2255_v6, %v2078_v5  ;;  %v2247_v28 = vld [vmem:[#allocation2 + $0xb4] sm:$0xf0]  ;;  %v1984_v5 = vld [vmem:[#allocation2 + $0x38] sm:$0xf0] }
  0xde   :  { %v2047_v29 = vor.u32 %v2247_v28, %v2046_v26  ;;  %v2231_v2 = vld [vmem:[#allocation2 + $0x34] sm:$0xf0] }
  0xdf   :  { %830 = vmatpush.bf16.msrb.mxu0 %v1967_v39  ;;  %973 = vmatpush.bf16.msra.mxu3 %v2107_v24  ;;  %v2262_v39 = vld [vmem:[#allocation2 + $0x12c] sm:$0xf0]  ;;  %v2011_v24 = vor.u32 %v2234_v19, %v2008_v21 }
  0xe0   :  { %923 = vmatpush.bf16.msra.mxu2 %v2135_v22  ;;  %v2103_v41 = vor.u32 %v2262_v39, %v2102_v38  ;;  %v2251_v22 = vld [vmem:[#allocation2 + $0xdc] sm:$0xf]  ;;  %v2006_v38 = vld [vmem:[#allocation2 + $0x50] sm:$0xf] }
  0xe1   :  { %v2536_v25 = vor.u32 %v2251_v22, %v2080_v23  ;;  %v2238_v39 = vld [vmem:[#allocation2 + $0x6c] sm:$0xf0] }
  0xe3   :  { %1019 = vmatpush.bf16.msra.mxu0 %v2207_v56  ;;  %974 = vmatpush.bf16.msra.mxu3 %v2075_v45  ;;  %v1979_v45 = vor.u32 %v2226_v40, %v1976_v42 }
  0xe4   :  { %924 = vmatpush.bf16.msra.mxu2 %v2103_v41  ;;  %v2007_v41 = vor.u32 %v2238_v39, %v2006_v38 }
  0xe7   :  { %1020 = vmatpush.bf16.msra.mxu0 %v2175_v11 }
  0xeb   :  { %1021 = vmatpush.bf16.msra.mxu0 %v2143_v30 }
  0xef   :  { %1022 = vmatpush.bf16.msra.mxu0 %v2111_v49  ;;  %v2239_v49 = vld [vmem:[#allocation2 + $0x74] sm:$0xf0] }
  0xf3   :  { %1023 = vmatpush.bf16.msra.mxu0 %v2079_v7 }
  0xf7   :  { %1024 = vmatpush.bf16.msra.mxu0 %v2047_v29 }
 0x117   :  { %v277_v46 = vpop.f32.mrf.mxu1 }
 0x118   :  { %v278_v57 = vadd.f32 %v2482_v53, %v277_v46  ;;  %v2514_v46 = vor.u32 %v2267_v43, %v2144_v44  ;;  %v2243_v43 = vld [vmem:[#allocation2 + $0x9c] sm:$0xf] }
 0x119   :  { %v2048_v44 = vld [vmem:[#allocation2 + $0xb8] sm:$0xf0] }
 0x11a   :  { %v317_v60 = vmax.f32 %v278_v57, 0.0  ;;  %1070 = vmatpush.bf16.msra.mxu1 %v2514_v46  ;;  %v2051_v47 = vor.u32 %v2243_v43, %v2048_v44 }
 0x11e   :  { %1071 = vmatpush.bf16.msra.mxu1 %v2525_v4 }
 0x11f   :  { %v279_v58 = vpop.f32.mrf.mxu1 }
 0x120   :  { %v280_v59 = vadd.f32 %v2482_v53, %v279_v58 }
 0x122   :  { %v318_v61 = vmax.f32 %v280_v59, 0.0  ;;  %v2070_v59 = vld [vmem:[#allocation2 + $0xd0] sm:$0xf]  ;;  %1072 = vmatpush.bf16.msra.mxu1 %v2536_v25 }
 0x123   :  { %v302_v58 = vpop.f32.mrf.mxu2 }
 0x124   :  { %v2486_v62 = vpack.c.bf16 %v318_v61, %v317_v60  ;;  %v2254_v60 = vld [vmem:[#allocation2 + $0xec] sm:$0xf0]  ;;  %v2242_v61 = vld [vmem:[#allocation2 + $0x94] sm:$0xf] }
 0x125   :  { %v2043_v3 = vor.u32 %v2242_v61, %v2040_v0  ;;  %v1974_v61 = vld [vmem:[#allocation2 + $0x10] sm:$0xf]  ;;  %v1982_v0 = vld [vmem:[#allocation2 + $0x18] sm:$0xf] }
 0x126   :  { %733 = vmatmul.bf16.vlgmr.msrb.gmra.mxu2 %v2486_v62  ;;  %782 = vmatmul.bf16.vlgmr.msrb.gmra.mxu3 %v2486_v62  ;;  %v1983_v6 = vor.u32 %v2231_v2, %v1982_v0 }
 0x127   :  { %831 = vmatmul.bf16.vlgmr.msrb.gmra.mxu0 %v2486_v62  ;;  %880 = vmatmul.bf16.vlgmr.msrb.gmra.mxu1 %v2486_v62  ;;  %v282_v63 = vpop.f32.mrf.mxu1 }
 0x128   :  { %v283_v12 = vadd.f32 %v2482_v53, %v282_v63  ;;  %v2071_v63 = vor.u32 %v2254_v60, %v2070_v59  ;;  %975 = vmatpush.bf16.msra.mxu3 %v2043_v3  ;;  %1073 = vmatpush.bf16.msra.mxu1 %v2051_v47  ;;  %v2227_v3 = vld [vmem:[#allocation2 + $0x1c] sm:$0xf] }
 0x129   :  { %v1987_v7 = vor.u32 %v2227_v3, %v1984_v5 }
 0x12a   :  { %v319_v14 = vmax.f32 %v283_v12, 0.0  ;;  %925 = vmatpush.bf16.msra.mxu2 %v2071_v63  ;;  %v2230_v63 = vld [vmem:[#allocation2 + $0x2c] sm:$0xf0] }
 0x12b   :  { %v304_v12 = vpop.f32.mrf.mxu2  ;;  %v1975_v1 = vor.u32 %v2230_v63, %v1974_v61 }
 0x12c   :  { %976 = vmatpush.bf16.msra.mxu3 %v2011_v24 }
 0x12f   :  { %v284_v13 = vpop.f32.mrf.mxu1 }
 0x130   :  { %v285_v18 = vadd.f32 %v2482_v53, %v284_v13  ;;  %977 = vmatpush.bf16.msra.mxu3 %v1979_v45 }
 0x132   :  { %v320_v15 = vmax.f32 %v285_v18, 0.0 }
 0x133   :  { %v307_v30 = vpop.f32.mrf.mxu2 }
 0x134   :  { %v2497_v16 = vpack.c.bf16 %v320_v15, %v319_v14  ;;  %v2038_v15 = vld [vmem:[#allocation2 + $0x90] sm:$0xf]  ;;  %2293 = vmatpush.bf16.msrb.mxu3 %v2492_v8 }
 0x136   :  { %738 = vmatmul.bf16.gmra.mxu2 %v2497_v16  ;;  %787 = vmatmul.bf16.gmra.mxu3 %v2497_v16 }
 0x137   :  { %836 = vmatmul.bf16.gmra.mxu0 %v2497_v16  ;;  %885 = vmatmul.bf16.gmra.mxu1 %v2497_v16  ;;  %v287_v17 = vpop.f32.mrf.mxu1 }
 0x138   :  { %v288_v31 = vadd.f32 %v2482_v53, %v287_v17  ;;  %v2246_v17 = vld [vmem:[#allocation2 + $0xac] sm:$0xf0]  ;;  %2294 = vmatpush.bf16.msrb.mxu3 %v2503_v27 }
 0x139   :  { %v2039_v20 = vor.u32 %v2246_v17, %v2038_v15 }
 0x13a   :  { %v321_v34 = vmax.f32 %v288_v31, 0.0  ;;  %v303_v31 = vadd.f32 %v2482_v53, %v302_v58 }
 0x13b   :  { %926 = vmatpush.bf16.msra.mxu2 %v2039_v20 }
 0x13c   :  { %2295 = vmatpush.bf16.msrb.mxu3 %v2514_v46 }
 0x13f   :  { %v289_v32 = vpop.f32.mrf.mxu1  ;;  %927 = vmatpush.bf16.msra.mxu2 %v2007_v41 }
 0x140   :  { %v290_v33 = vadd.f32 %v2482_v53, %v289_v32  ;;  %v305_v32 = vadd.f32 %v2482_v53, %v304_v12  ;;  %2296 = vmatpush.bf16.msrb.mxu3 %v2525_v4 }
 0x142   :  { %v322_v35 = vmax.f32 %v290_v33, 0.0  ;;  %v327_v33 = vmax.f32 %v303_v31, 0.0 }
 0x143   :  { %928 = vmatpush.bf16.msra.mxu2 %v1975_v1 }
 0x144   :  { %v2508_v36 = vpack.c.bf16 %v322_v35, %v321_v34  ;;  %v328_v34 = vmax.f32 %v305_v32, 0.0  ;;  %2297 = vmatpush.bf16.msrb.mxu3 %v2536_v25 }
 0x146   :  { %743 = vmatmul.bf16.gmra.mxu2 %v2508_v36  ;;  %792 = vmatmul.bf16.gmra.mxu3 %v2508_v36  ;;  %v2541_v35 = vpack.c.bf16 %v328_v34, %v327_v33 }
 0x147   :  { %841 = vmatmul.bf16.gmra.mxu0 %v2508_v36  ;;  %890 = vmatmul.bf16.gmra.mxu1 %v2508_v36  ;;  %v292_v37 = vpop.f32.mrf.mxu1 }
 0x148   :  { %v293_v50 = vadd.f32 %v2482_v53, %v292_v37  ;;  %v309_v37 = vpop.f32.mrf.mxu2  ;;  %2298 = vmatpush.bf16.msrb.mxu3 %v2051_v47 }
 0x14a   :  { %v323_v54 = vmax.f32 %v293_v50, 0.0  ;;  %v2235_v50 = vld [vmem:[#allocation2 + $0x5c] sm:$0xf] }
 0x14f   :  { %v294_v51 = vpop.f32.mrf.mxu1 }
 0x150   :  { %v295_v52 = vadd.f32 %v2482_v53, %v294_v51  ;;  %v2015_v51 = vor.u32 %v2239_v49, %v2014_v48  ;;  %v312_v58 = vpop.f32.mrf.mxu2 }
 0x151   :  { %v313_v27 = vadd.f32 %v2482_v53, %v312_v58 }
 0x152   :  { %v324_v55 = vmax.f32 %v295_v52, 0.0  ;;  %v2016_v52 = vld [vmem:[#allocation2 + $0x78] sm:$0xf0]  ;;  %1025 = vmatpush.bf16.msra.mxu0 %v2015_v51 }
 0x153   :  { %v331_v46 = vmax.f32 %v313_v27, 0.0 }
 0x154   :  { %v2519_v56 = vpack.c.bf16 %v324_v55, %v323_v54  ;;  %v2019_v54 = vor.u32 %v2235_v50, %v2016_v52  ;;  %v308_v55 = vadd.f32 %v2482_v53, %v307_v30 }
 0x156   :  { %748 = vmatmul.bf16.gmra.mxu2 %v2519_v56  ;;  %797 = vmatmul.bf16.gmra.mxu3 %v2519_v56  ;;  %v329_v59 = vmax.f32 %v308_v55, 0.0 }
 0x157   :  { %846 = vmatmul.bf16.gmra.mxu0 %v2519_v56  ;;  %895 = vmatmul.bf16.gmra.mxu1 %v2519_v56  ;;  %v297_v57 = vpop.f32.mrf.mxu1 }
 0x158   :  { %v298_v9 = vadd.f32 %v2482_v53, %v297_v57  ;;  %v310_v57 = vadd.f32 %v2482_v53, %v309_v37  ;;  %1074 = vmatpush.bf16.msra.mxu1 %v2019_v54  ;;  %1026 = vmatpush.bf16.msra.mxu0 %v1983_v6  ;;  %v314_v8 = vpop.f32.mrf.mxu2 }
 0x159   :  { %2299 = vmatpush.bf16.msrb.mxu3 %v2019_v54 }
 0x15a   :  { %v325_v13 = vmax.f32 %v298_v9, 0.0  ;;  %v330_v60 = vmax.f32 %v310_v57, 0.0 }
 0x15c   :  { %v2551_v9 = vpack.c.bf16 %v330_v60, %v329_v59  ;;  %1075 = vmatpush.bf16.msra.mxu1 %v1987_v7 }
 0x15d   :  { %2300 = vmatpush.bf16.msrb.mxu3 %v1987_v7 }
 0x15f   :  { %v299_v10 = vpop.f32.mrf.mxu1 }
 0x160   :  { %v300_v11 = vadd.f32 %v2482_v53, %v299_v10  ;;  %v315_v10 = vadd.f32 %v2482_v53, %v314_v8 }
 0x162   :  { %v326_v18 = vmax.f32 %v300_v11, 0.0  ;;  %v332_v11 = vmax.f32 %v315_v10, 0.0 }
 0x164   :  { %v2530_v14 = vpack.c.bf16 %v326_v18, %v325_v13  ;;  %v2562_v12 = vpack.c.bf16 %v332_v11, %v331_v46 }
 0x166   :  { %753 = vmatmul.bf16.gmra.mxu2 %v2530_v14  ;;  %802 = vmatmul.bf16.gmra.mxu3 %v2530_v14 }
 0x167   :  { %851 = vmatmul.bf16.gmra.mxu0 %v2530_v14  ;;  %900 = vmatmul.bf16.gmra.mxu1 %v2530_v14 }
 0x176   :  { %758 = vmatmul.bf16.gmra.mxu2 %v2541_v35  ;;  %807 = vmatmul.bf16.gmra.mxu3 %v2541_v35 }
 0x177   :  { %856 = vmatmul.bf16.gmra.mxu0 %v2541_v35  ;;  %905 = vmatmul.bf16.gmra.mxu1 %v2541_v35 }
 0x186   :  { %763 = vmatmul.bf16.gmra.mxu2 %v2551_v9  ;;  %812 = vmatmul.bf16.gmra.mxu3 %v2551_v9 }
 0x187   :  { %861 = vmatmul.bf16.gmra.mxu0 %v2551_v9  ;;  %910 = vmatmul.bf16.gmra.mxu1 %v2551_v9 }
 0x196   :  { %768 = vmatmul.bf16.gmra.mxu2 %v2562_v12  ;;  %817 = vmatmul.bf16.gmra.mxu3 %v2562_v12 }
 0x197   :  { %866 = vmatmul.bf16.gmra.mxu0 %v2562_v12  ;;  %915 = vmatmul.bf16.gmra.mxu1 %v2562_v12 }
 0x1a4   :  { %v832_v4 = vpop.f32.mrf.mxu0  ;;  %v881_v13 = vpop.f32.mrf.mxu1 }
 0x1a6   :  { %929 = vmatmul.bf16.vlgmr.msra.gmra.mxu2 %v2486_v62  ;;  %978 = vmatmul.bf16.vlgmr.msra.gmra.mxu3 %v2486_v62 }
 0x1a7   :  { %1027 = vmatmul.bf16.vlgmr.msra.gmra.mxu0 %v2486_v62  ;;  %1076 = vmatmul.bf16.vlgmr.msra.gmra.mxu1 %v2486_v62 }
 0x1a9   :  { %v734_v53 = vpop.f32.mrf.mxu2  ;;  %v783_v18 = vpop.f32.mrf.mxu3 }
 0x1ac   :  { %v834_v15 = vpop.f32.mrf.mxu0  ;;  %v883_v17 = vpop.f32.mrf.mxu1 }
 0x1ad   :  { %v1131_v19 = vmax.f32 %v832_v4, %v834_v15  ;;  %v1138_v20 = vmax.f32 %v881_v13, %v883_v17 }
 0x1af   :  { %v1132_v25 = vrot.slane %v1131_v19, 4  ;;  %v1139_v29 = vrot.slane %v1138_v20, 4 }
 0x1b1   :  { %v736_v21 = vpop.f32.mrf.mxu2  ;;  %v785_v22 = vpop.f32.mrf.mxu3  ;;  %v1133_v62 = vmax.f32 %v1131_v19, %v1132_v25  ;;  %v1140_v30 = vmax.f32 %v1138_v20, %v1139_v29 }
 0x1b2   :  { %v1117_v23 = vmax.f32 %v734_v53, %v736_v21  ;;  %v1124_v24 = vmax.f32 %v783_v18, %v785_v22 }
 0x1b3   :  { %v1134_v37 = vrot.slane %v1133_v62, 2  ;;  %v1141_v40 = vrot.slane %v1140_v30, 2 }
 0x1b4   :  { %v837_v26 = vpop.f32.mrf.mxu0  ;;  %v886_v28 = vpop.f32.mrf.mxu1  ;;  %v1118_v31 = vrot.slane %v1117_v23, 4  ;;  %v1125_v34 = vrot.slane %v1124_v24, 4 }
 0x1b5   :  { %v1135_v48 = vmax.f32 %v1133_v62, %v1134_v37  ;;  %v1142_v49 = vmax.f32 %v1140_v30, %v1141_v40 }
 0x1b6   :  { %934 = vmatmul.bf16.gmra.mxu2 %v2497_v16  ;;  %983 = vmatmul.bf16.gmra.mxu3 %v2497_v16  ;;  %v1119_v41 = vmax.f32 %v1117_v23, %v1118_v31  ;;  %v1126_v44 = vmax.f32 %v1124_v24, %v1125_v34 }
 0x1b7   :  { %1032 = vmatmul.bf16.gmra.mxu0 %v2497_v16  ;;  %1081 = vmatmul.bf16.gmra.mxu1 %v2497_v16  ;;  %v1136_v61 = vrot.slane %v1135_v48, 1  ;;  %v1143_v3 = vrot.slane %v1142_v49, 1 }
 0x1b8   :  { %v1120_v50 = vrot.slane %v1119_v41, 2  ;;  %v1127_v55 = vrot.slane %v1126_v44, 2 }
 0x1b9   :  { %v739_v32 = vpop.f32.mrf.mxu2  ;;  %v788_v33 = vpop.f32.mrf.mxu3  ;;  %v1137_v53 = vmax.f32 %v1135_v48, %v1136_v61  ;;  %v1144_v18 = vmax.f32 %v1142_v49, %v1143_v3 }
 0x1ba   :  { %v1121_v5 = vmax.f32 %v1119_v41, %v1120_v50  ;;  %v1128_v8 = vmax.f32 %v1126_v44, %v1127_v55 }
 0x1bc   :  { %v839_v38 = vpop.f32.mrf.mxu0  ;;  %v888_v39 = vpop.f32.mrf.mxu1  ;;  %v1122_v21 = vrot.slane %v1121_v5, 1  ;;  %v1129_v22 = vrot.slane %v1128_v8, 1 }
 0x1bd   :  { %v1187_v42 = vmax.f32 %v837_v26, %v839_v38  ;;  %v1194_v43 = vmax.f32 %v886_v28, %v888_v39 }
 0x1bf   :  { %v1188_v45 = vrot.slane %v1187_v42, 4  ;;  %v1195_v47 = vrot.slane %v1194_v43, 4 }
 0x1c1   :  { %v1189_v16 = vmax.f32 %v1187_v42, %v1188_v45  ;;  %v1196_v51 = vmax.f32 %v1194_v43, %v1195_v47  ;;  %v741_v52 = vpop.f32.mrf.mxu2  ;;  %v790_v54 = vpop.f32.mrf.mxu3 }
 0x1c2   :  { %v1173_v57 = vmax.f32 %v739_v32, %v741_v52  ;;  %v1180_v58 = vmax.f32 %v788_v33, %v790_v54  ;;  %v1123_v32 = vmax.f32 %v1121_v5, %v1122_v21  ;;  %v1130_v33 = vmax.f32 %v1128_v8, %v1129_v22 }
 0x1c3   :  { %v1190_v59 = vrot.slane %v1189_v16, 2  ;;  %v1197_v60 = vrot.slane %v1196_v51, 2 }
 0x1c4   :  { %v1174_v63 = vrot.slane %v1173_v57, 4  ;;  %v1181_v0 = vrot.slane %v1180_v58, 4  ;;  %v842_v1 = vpop.f32.mrf.mxu0  ;;  %v891_v2 = vpop.f32.mrf.mxu1 }
 0x1c5   :  { %v1191_v6 = vmax.f32 %v1189_v16, %v1190_v59  ;;  %v1198_v7 = vmax.f32 %v1196_v51, %v1197_v60 }
 0x1c6   :  { %v1175_v27 = vmax.f32 %v1173_v57, %v1174_v63  ;;  %v1182_v10 = vmax.f32 %v1180_v58, %v1181_v0  ;;  %939 = vmatmul.bf16.gmra.mxu2 %v2508_v36  ;;  %988 = vmatmul.bf16.gmra.mxu3 %v2508_v36 }
 0x1c7   :  { %v1192_v46 = vrot.slane %v1191_v6, 1  ;;  %v1199_v11 = vrot.slane %v1198_v7, 1  ;;  %1037 = vmatmul.bf16.gmra.mxu0 %v2508_v36  ;;  %1086 = vmatmul.bf16.gmra.mxu1 %v2508_v36 }
 0x1c8   :  { %v1176_v4 = vrot.slane %v1175_v27, 2  ;;  %v1183_v13 = vrot.slane %v1182_v10, 2 }
 0x1c9   :  { %v1193_v15 = vmax.f32 %v1191_v6, %v1192_v46  ;;  %v1200_v17 = vmax.f32 %v1198_v7, %v1199_v11  ;;  %v744_v19 = vpop.f32.mrf.mxu2  ;;  %v793_v20 = vpop.f32.mrf.mxu3 }
 0x1ca   :  { %v1177_v23 = vmax.f32 %v1175_v27, %v1176_v4  ;;  %v1184_v24 = vmax.f32 %v1182_v10, %v1183_v13 }
 0x1cb   :  { %v1654_v25 = vsel %vm1633_vm4, %v1193_v15, %v1137_v53  ;;  %v1661_v26 = vsel %vm1633_vm4, %v1200_v17, %v1144_v18 }
 0x1cc   :  { %v1178_v28 = vrot.slane %v1177_v23, 1  ;;  %v1185_v29 = vrot.slane %v1184_v24, 1  ;;  %v844_v36 = vpop.f32.mrf.mxu0  ;;  %v893_v62 = vpop.f32.mrf.mxu1 }
 0x1cd   :  { %v1243_v30 = vmax.f32 %v842_v1, %v844_v36  ;;  %v1250_v31 = vmax.f32 %v891_v2, %v893_v62 }
 0x1ce   :  { %v1179_v34 = vmax.f32 %v1177_v23, %v1178_v28  ;;  %v1186_v37 = vmax.f32 %v1184_v24, %v1185_v29 }
 0x1cf   :  { %v1244_v38 = vrot.slane %v1243_v30, 4  ;;  %v1251_v39 = vrot.slane %v1250_v31, 4 }
 0x1d0   :  { %v1634_v40 = vsel %vm1633_vm4, %v1179_v34, %v1123_v32  ;;  %v1647_v41 = vsel %vm1633_vm4, %v1186_v37, %v1130_v33 }
 0x1d1   :  { %v1245_v42 = vmax.f32 %v1243_v30, %v1244_v38  ;;  %v1252_v43 = vmax.f32 %v1250_v31, %v1251_v39  ;;  %v746_v44 = vpop.f32.mrf.mxu2  ;;  %v795_v45 = vpop.f32.mrf.mxu3 }
 0x1d2   :  { %v1229_v47 = vmax.f32 %v744_v19, %v746_v44  ;;  %v1236_v48 = vmax.f32 %v793_v20, %v795_v45 }
 0x1d3   :  { %v1246_v49 = vrot.slane %v1245_v42, 2  ;;  %v1253_v50 = vrot.slane %v1252_v43, 2 }
 0x1d4   :  { %v1230_v16 = vrot.slane %v1229_v47, 4  ;;  %v1237_v51 = vrot.slane %v1236_v48, 4  ;;  %v847_v52 = vpop.f32.mrf.mxu0  ;;  %v896_v54 = vpop.f32.mrf.mxu1 }
 0x1d5   :  { %v1247_v55 = vmax.f32 %v1245_v42, %v1246_v49  ;;  %v1254_v57 = vmax.f32 %v1252_v43, %v1253_v50 }
 0x1d6   :  { %v1231_v58 = vmax.f32 %v1229_v47, %v1230_v16  ;;  %v1238_v59 = vmax.f32 %v1236_v48, %v1237_v51  ;;  %944 = vmatmul.bf16.gmra.mxu2 %v2519_v56  ;;  %993 = vmatmul.bf16.gmra.mxu3 %v2519_v56 }
 0x1d7   :  { %v1248_v60 = vrot.slane %v1247_v55, 1  ;;  %v1255_v61 = vrot.slane %v1254_v57, 1  ;;  %1042 = vmatmul.bf16.gmra.mxu0 %v2519_v56  ;;  %1091 = vmatmul.bf16.gmra.mxu1 %v2519_v56 }
 0x1d8   :  { %v1232_v63 = vrot.slane %v1231_v58, 2  ;;  %v1239_v0 = vrot.slane %v1238_v59, 2 }
 0x1d9   :  { %v1249_v1 = vmax.f32 %v1247_v55, %v1248_v60  ;;  %v1256_v2 = vmax.f32 %v1254_v57, %v1255_v61  ;;  %v749_v3 = vpop.f32.mrf.mxu2  ;;  %v798_v5 = vpop.f32.mrf.mxu3 }
 0x1da   :  { %v1233_v6 = vmax.f32 %v1231_v58, %v1232_v63  ;;  %v1240_v7 = vmax.f32 %v1238_v59, %v1239_v0 }
 0x1db   :  { %v1655_v8 = vsel %vm1635_vm5, %v1249_v1, %v1654_v25  ;;  %v1662_v27 = vsel %vm1635_vm5, %v1256_v2, %v1661_v26 }
 0x1dc   :  { %v1234_v10 = vrot.slane %v1233_v6, 1  ;;  %v1241_v46 = vrot.slane %v1240_v7, 1  ;;  %v849_v11 = vpop.f32.mrf.mxu0  ;;  %v898_v4 = vpop.f32.mrf.mxu1 }
 0x1dd   :  { %v1299_v13 = vmax.f32 %v847_v52, %v849_v11  ;;  %v1306_v53 = vmax.f32 %v896_v54, %v898_v4 }
 0x1de   :  { %v1235_v56 = vmax.f32 %v1233_v6, %v1234_v10  ;;  %v1242_v18 = vmax.f32 %v1240_v7, %v1241_v46 }
 0x1df   :  { %v1300_v15 = vrot.slane %v1299_v13, 4  ;;  %v1307_v17 = vrot.slane %v1306_v53, 4 }
 0x1e0   :  { %v1636_v19 = vsel %vm1635_vm5, %v1235_v56, %v1634_v40  ;;  %v1648_v20 = vsel %vm1635_vm5, %v1242_v18, %v1647_v41 }
 0x1e1   :  { %v1301_v21 = vmax.f32 %v1299_v13, %v1300_v15  ;;  %v1308_v22 = vmax.f32 %v1306_v53, %v1307_v17  ;;  %v751_v23 = vpop.f32.mrf.mxu2  ;;  %v800_v24 = vpop.f32.mrf.mxu3 }
 0x1e2   :  { %v1285_v25 = vmax.f32 %v749_v3, %v751_v23  ;;  %v1292_v26 = vmax.f32 %v798_v5, %v800_v24 }
 0x1e3   :  { %v1302_v28 = vrot.slane %v1301_v21, 2  ;;  %v1309_v29 = vrot.slane %v1308_v22, 2 }
 0x1e4   :  { %v1286_v36 = vrot.slane %v1285_v25, 4  ;;  %v1293_v62 = vrot.slane %v1292_v26, 4  ;;  %v852_v30 = vpop.f32.mrf.mxu0  ;;  %v901_v31 = vpop.f32.mrf.mxu1 }
 0x1e5   :  { %v1303_v32 = vmax.f32 %v1301_v21, %v1302_v28  ;;  %v1310_v33 = vmax.f32 %v1308_v22, %v1309_v29 }
 0x1e6   :  { %v1287_v34 = vmax.f32 %v1285_v25, %v1286_v36  ;;  %v1294_v37 = vmax.f32 %v1292_v26, %v1293_v62  ;;  %949 = vmatmul.bf16.gmra.mxu2 %v2530_v14  ;;  %998 = vmatmul.bf16.gmra.mxu3 %v2530_v14 }
 0x1e7   :  { %v1304_v38 = vrot.slane %v1303_v32, 1  ;;  %v1311_v39 = vrot.slane %v1310_v33, 1  ;;  %1047 = vmatmul.bf16.gmra.mxu0 %v2530_v14  ;;  %1096 = vmatmul.bf16.gmra.mxu1 %v2530_v14 }
 0x1e8   :  { %v1288_v40 = vrot.slane %v1287_v34, 2  ;;  %v1295_v41 = vrot.slane %v1294_v37, 2 }
 0x1e9   :  { %v1305_v42 = vmax.f32 %v1303_v32, %v1304_v38  ;;  %v1312_v43 = vmax.f32 %v1310_v33, %v1311_v39  ;;  %v754_v44 = vpop.f32.mrf.mxu2  ;;  %v803_v45 = vpop.f32.mrf.mxu3 }
 0x1ea   :  { %v1289_v47 = vmax.f32 %v1287_v34, %v1288_v40  ;;  %v1296_v48 = vmax.f32 %v1294_v37, %v1295_v41 }
 0x1eb   :  { %v2597_v49 = vsel %vm1637_vm6, %v1305_v42, %v1655_v8  ;;  %v2600_v50 = vsel %vm1637_vm6, %v1312_v43, %v1662_v27 }
 0x1ec   :  { %v1290_v16 = vrot.slane %v1289_v47, 1  ;;  %v1297_v51 = vrot.slane %v1296_v48, 1  ;;  %v854_v52 = vpop.f32.mrf.mxu0  ;;  %v903_v54 = vpop.f32.mrf.mxu1 }
 0x1ed   :  { %v1355_v7 = vmax.f32 %v852_v30, %v854_v52  ;;  %v1362_v8 = vmax.f32 %v901_v31, %v903_v54 }
 0x1ee   :  { %v1291_v14 = vmax.f32 %v1289_v47, %v1290_v16  ;;  %v1298_v55 = vmax.f32 %v1296_v48, %v1297_v51 }
 0x1ef   :  { %v1356_v46 = vrot.slane %v1355_v7, 4  ;;  %v1363_v11 = vrot.slane %v1362_v8, 4 }
 0x1f0   :  { %v2603_v57 = vsel %vm1637_vm6, %v1291_v14, %v1636_v19  ;;  %v2606_v58 = vsel %vm1637_vm6, %v1298_v55, %v1648_v20 }
 0x1f1   :  { %v756_v59 = vpop.f32.mrf.mxu2  ;;  %v805_v60 = vpop.f32.mrf.mxu3  ;;  %v1357_v18 = vmax.f32 %v1355_v7, %v1356_v46  ;;  %v1364_v15 = vmax.f32 %v1362_v8, %v1363_v11 }
 0x1f2   :  { %v1348_v4 = vmax.f32 %v803_v45, %v805_v60 }
 0x1f3   :  { %v1358_v24 = vrot.slane %v1357_v18, 2  ;;  %v1365_v25 = vrot.slane %v1364_v15, 2 }
 0x1f4   :  { %v857_v61 = vpop.f32.mrf.mxu0  ;;  %v906_v63 = vpop.f32.mrf.mxu1  ;;  %v1349_v19 = vrot.slane %v1348_v4, 4 }
 0x1f5   :  { %v1359_v34 = vmax.f32 %v1357_v18, %v1358_v24  ;;  %v1366_v37 = vmax.f32 %v1364_v15, %v1365_v25 }
 0x1f6   :  { %954 = vmatmul.bf16.gmra.mxu2 %v2541_v35  ;;  %1003 = vmatmul.bf16.gmra.mxu3 %v2541_v35  ;;  %v1350_v36 = vmax.f32 %v1348_v4, %v1349_v19 }
 0x1f7   :  { %1052 = vmatmul.bf16.gmra.mxu0 %v2541_v35  ;;  %1101 = vmatmul.bf16.gmra.mxu1 %v2541_v35  ;;  %v1341_v35 = vmax.f32 %v754_v44, %v756_v59  ;;  %v1360_v52 = vrot.slane %v1359_v34, 1  ;;  %v1367_v54 = vrot.slane %v1366_v37, 1 }
 0x1f8   :  { %v1351_v43 = vrot.slane %v1350_v36, 2 }
 0x1f9   :  { %v759_v0 = vpop.f32.mrf.mxu2  ;;  %v808_v1 = vpop.f32.mrf.mxu3  ;;  %v1342_v17 = vrot.slane %v1341_v35, 4  ;;  %v1361_v7 = vmax.f32 %v1359_v34, %v1360_v52  ;;  %v1368_v8 = vmax.f32 %v1366_v37, %v1367_v54 }
 0x1fb   :  { %v1343_v29 = vmax.f32 %v1341_v35, %v1342_v17 }
 0x1fc   :  { %v859_v2 = vpop.f32.mrf.mxu0  ;;  %v908_v3 = vpop.f32.mrf.mxu1 }
 0x1fd   :  { %v1411_v13 = vmax.f32 %v857_v61, %v859_v2  ;;  %v1418_v21 = vmax.f32 %v906_v63, %v908_v3  ;;  %v1344_v42 = vrot.slane %v1343_v29, 2  ;;  %v1352_v63 = vmax.f32 %v1350_v36, %v1351_v43 }
 0x1ff   :  { %v1412_v20 = vrot.slane %v1411_v13, 4  ;;  %v1419_v62 = vrot.slane %v1418_v21, 4  ;;  %v1345_v61 = vmax.f32 %v1343_v29, %v1344_v42  ;;  %v1353_v4 = vrot.slane %v1352_v63, 1 }
 0x201   :  { %v761_v5 = vpop.f32.mrf.mxu2  ;;  %v810_v6 = vpop.f32.mrf.mxu3  ;;  %v1420_v45 = vmax.f32 %v1418_v21, %v1419_v62  ;;  %v1346_v35 = vrot.slane %v1345_v61, 1  ;;  %v1657_v21 = vsel %vm1639_vm7, %v1361_v7, %v2597_v49 }
 0x202   :  { %v1397_v30 = vmax.f32 %v759_v0, %v761_v5  ;;  %v1404_v31 = vmax.f32 %v808_v1, %v810_v6 }
 0x203   :  { %v1421_v1 = vrot.slane %v1420_v45, 2  ;;  %v1347_v36 = vmax.f32 %v1345_v61, %v1346_v35 }
 0x204   :  { %v862_v27 = vpop.f32.mrf.mxu0  ;;  %v911_v10 = vpop.f32.mrf.mxu1  ;;  %v1398_v16 = vrot.slane %v1397_v30, 4  ;;  %v1405_v51 = vrot.slane %v1404_v31, 4 }
 0x206   :  { %959 = vmatmul.bf16.gmra.mxu2 %v2551_v9  ;;  %1008 = vmatmul.bf16.gmra.mxu3 %v2551_v9  ;;  %v1399_v2 = vmax.f32 %v1397_v30, %v1398_v16  ;;  %v1406_v3 = vmax.f32 %v1404_v31, %v1405_v51 }
 0x207   :  { %1057 = vmatmul.bf16.gmra.mxu0 %v2551_v9  ;;  %1106 = vmatmul.bf16.gmra.mxu1 %v2551_v9  ;;  %v1413_v9 = vmax.f32 %v1411_v13, %v1412_v20 }
 0x208   :  { %v1400_v15 = vrot.slane %v1399_v2, 2  ;;  %v1407_v17 = vrot.slane %v1406_v3, 2 }
 0x209   :  { %v764_v53 = vpop.f32.mrf.mxu2  ;;  %v813_v56 = vpop.f32.mrf.mxu3  ;;  %v1414_v44 = vrot.slane %v1413_v9, 2 }
 0x20a   :  { %v1401_v31 = vmax.f32 %v1399_v2, %v1400_v15 }
 0x20b   :  { %v1415_v0 = vmax.f32 %v1413_v9, %v1414_v44  ;;  %v1354_v9 = vmax.f32 %v1352_v63, %v1353_v4 }
 0x20c   :  { %v864_v22 = vpop.f32.mrf.mxu0  ;;  %v913_v23 = vpop.f32.mrf.mxu1  ;;  %v1402_v52 = vrot.slane %v1401_v31, 1 }
 0x20d   :  { %v1467_v26 = vmax.f32 %v862_v27, %v864_v22  ;;  %v1474_v28 = vmax.f32 %v911_v10, %v913_v23  ;;  %v1416_v13 = vrot.slane %v1415_v0, 1  ;;  %v1664_v22 = vsel %vm1639_vm7, %v1368_v8, %v2600_v50 }
 0x20f   :  { %v1468_v38 = vrot.slane %v1467_v26, 4  ;;  %v1475_v39 = vrot.slane %v1474_v28, 4  ;;  %v1417_v62 = vmax.f32 %v1415_v0, %v1416_v13 }
 0x211   :  { %v766_v32 = vpop.f32.mrf.mxu2  ;;  %v815_v33 = vpop.f32.mrf.mxu3  ;;  %v1469_v14 = vmax.f32 %v1467_v26, %v1468_v38  ;;  %v1476_v55 = vmax.f32 %v1474_v28, %v1475_v39 }
 0x212   :  { %v1453_v40 = vmax.f32 %v764_v53, %v766_v32  ;;  %v1460_v41 = vmax.f32 %v813_v56, %v815_v33  ;;  %v1422_v53 = vmax.f32 %v1420_v45, %v1421_v1  ;;  %v1408_v32 = vmax.f32 %v1406_v3, %v1407_v17 }
 0x213   :  { %v1470_v27 = vrot.slane %v1469_v14, 2  ;;  %v1477_v10 = vrot.slane %v1476_v55, 2 }
 0x214   :  { %v867_v47 = vpop.f32.mrf.mxu0  ;;  %v916_v48 = vpop.f32.mrf.mxu1  ;;  %v1454_v59 = vrot.slane %v1453_v40, 4  ;;  %v1461_v60 = vrot.slane %v1460_v41, 4  ;;  %v1423_v30 = vrot.slane %v1422_v53, 1  ;;  %v1409_v54 = vrot.slane %v1408_v32, 1 }
 0x215   :  { %v1471_v23 = vmax.f32 %v1469_v14, %v1470_v27  ;;  %v1478_v24 = vmax.f32 %v1476_v55, %v1477_v10  ;;  %v1403_v27 = vmax.f32 %v1401_v31, %v1402_v52 }
 0x216   :  { %964 = vmatmul.bf16.gmra.mxu2 %v2562_v12  ;;  %1013 = vmatmul.bf16.gmra.mxu3 %v2562_v12  ;;  %v1455_v46 = vmax.f32 %v1453_v40, %v1454_v59  ;;  %v1462_v11 = vmax.f32 %v1460_v41, %v1461_v60  ;;  %v1424_v45 = vmax.f32 %v1422_v53, %v1423_v30 }
 0x217   :  { %1062 = vmatmul.bf16.gmra.mxu0 %v2562_v12  ;;  %v1472_v38 = vrot.slane %v1471_v23, 1  ;;  %v1479_v39 = vrot.slane %v1478_v24, 1  ;;  %v1410_v10 = vmax.f32 %v1408_v32, %v1409_v54 }
 0x218   :  { %v1456_v25 = vrot.slane %v1455_v46, 2  ;;  %v1463_v26 = vrot.slane %v1462_v11, 2 }
 0x219   :  { %v769_v5 = vpop.f32.mrf.mxu2  ;;  %v818_v6 = vpop.f32.mrf.mxu3  ;;  %v1473_v59 = vmax.f32 %v1471_v23, %v1472_v38  ;;  %v1480_v60 = vmax.f32 %v1478_v24, %v1479_v39  ;;  %v1640_v24 = vsel %vm1639_vm7, %v1347_v36, %v2603_v57 }
 0x21a   :  { %v1457_v41 = vmax.f32 %v1455_v46, %v1456_v25  ;;  %v1464_v42 = vmax.f32 %v1462_v11, %v1463_v26  ;;  %v1650_v25 = vsel %vm1639_vm7, %v1354_v9, %v2606_v58 }
 0x21c   :  { %v869_v56 = vpop.f32.mrf.mxu0  ;;  %v918_v18 = vpop.f32.mrf.mxu1  ;;  %v1458_v0 = vrot.slane %v1457_v41, 1  ;;  %v1465_v1 = vrot.slane %v1464_v42, 1 }
 0x21d   :  { %v1523_v19 = vmax.f32 %v867_v47, %v869_v56  ;;  %v1530_v20 = vmax.f32 %v916_v48, %v918_v18 }
 0x21e   :  { %v1459_v18 = vmax.f32 %v1457_v41, %v1458_v0  ;;  %v1466_v15 = vmax.f32 %v1464_v42, %v1465_v1 }
 0x21f   :  { %v1524_v28 = vrot.slane %v1523_v19, 4  ;;  %v1531_v29 = vrot.slane %v1530_v20, 4 }
 0x221   :  { %v1525_v33 = vmax.f32 %v1523_v19, %v1524_v28  ;;  %v1532_v34 = vmax.f32 %v1530_v20, %v1531_v29  ;;  %v771_v37 = vpop.f32.mrf.mxu2  ;;  %v820_v49 = vpop.f32.mrf.mxu3  ;;  %v1642_v29 = vsel %vm1641_vm8, %v1403_v27, %v1640_v24 }
 0x222   :  { %v1509_v50 = vmax.f32 %v769_v5, %v771_v37  ;;  %v1516_v40 = vmax.f32 %v818_v6, %v820_v49  ;;  %v1658_v5 = vsel %vm1641_vm8, %v1417_v62, %v1657_v21  ;;  %v1665_v6 = vsel %vm1641_vm8, %v1424_v45, %v1664_v22 }
 0x223   :  { %v1526_v43 = vrot.slane %v1525_v33, 2  ;;  %v1533_v44 = vrot.slane %v1532_v34, 2  ;;  %v1659_v13 = vsel %vm1643_vm9, %v1473_v59, %v1658_v5  ;;  %v1651_v62 = vsel %vm1641_vm8, %v1410_v10, %v1650_v25 }
 0x224   :  { %v1510_v47 = vrot.slane %v1509_v50, 4  ;;  %v1517_v48 = vrot.slane %v1516_v40, 4  ;;  %v1028_v16 = vpop.f32.mrf.mxu0  ;;  %v1077_v51 = vpop.f32.mrf.mxu1  ;;  %v1644_v32 = vsel %vm1643_vm9, %v1459_v18, %v1642_v29 }
 0x225   :  { %v1527_v14 = vmax.f32 %v1525_v33, %v1526_v43  ;;  %v1534_v55 = vmax.f32 %v1532_v34, %v1533_v44  ;;  %v1652_v33 = vsel %vm1643_vm9, %v1466_v15, %v1651_v62 }
 0x226   :  { %v1511_v61 = vmax.f32 %v1509_v50, %v1510_v47  ;;  %v1518_v63 = vmax.f32 %v1516_v40, %v1517_v48  ;;  %1111 = vmatmul.bf16.vlgmr.msrb.gmra.mxu3 %v2562_v12  ;;  %v1666_v12 = vsel %vm1643_vm9, %v1480_v60, %v1665_v6 }
 0x227   :  { %v1528_v2 = vrot.slane %v1527_v14, 1  ;;  %v1535_v3 = vrot.slane %v1534_v55, 1 }
 0x228   :  { %v1512_v7 = vrot.slane %v1511_v61, 2  ;;  %v1519_v8 = vrot.slane %v1518_v63, 2 }
 0x229   :  { %v1529_v46 = vmax.f32 %v1527_v14, %v1528_v2  ;;  %v1536_v11 = vmax.f32 %v1534_v55, %v1535_v3  ;;  %v930_v35 = vpop.f32.mrf.mxu2  ;;  %v979_v4 = vpop.f32.mrf.mxu3 }
 0x22a   :  { %v1513_v53 = vmax.f32 %v1511_v61, %v1512_v7  ;;  %v1520_v56 = vmax.f32 %v1518_v63, %v1519_v8 }
 0x22b   :  { %v1660_v17 = vsel %vm1645_vm10, %v1529_v46, %v1659_v13  ;;  %v1667_v19 = vsel %vm1645_vm10, %v1536_v11, %v1666_v12 }
 0x22c   :  { %1706 = vst [vmem:[#allocation5 + $0x10] sm:$0xff] %v1660_v17  ;;  %v1514_v20 = vrot.slane %v1513_v53, 1  ;;  %v1521_v21 = vrot.slane %v1520_v56, 1  ;;  %v1030_v22 = vpop.f32.mrf.mxu0  ;;  %v1079_v23 = vpop.f32.mrf.mxu1 }
 0x22d   :  { %1707 = vst [vmem:[#allocation5 + $0x18] sm:$0xff] %v1667_v19  ;;  %v1159_v26 = vmax.f32 %v1028_v16, %v1030_v22  ;;  %v1166_v28 = vmax.f32 %v1077_v51, %v1079_v23 }
 0x22e   :  { %v1515_v30 = vmax.f32 %v1513_v53, %v1514_v20  ;;  %v1522_v31 = vmax.f32 %v1520_v56, %v1521_v21 }
 0x22f   :  { %v1160_v39 = vrot.slane %v1159_v26, 4  ;;  %v1167_v50 = vrot.slane %v1166_v28, 4 }
 0x230   :  { %v1646_v34 = vsel %vm1645_vm10, %v1515_v30, %v1644_v32  ;;  %v1653_v57 = vsel %vm1645_vm10, %v1522_v31, %v1652_v33 }
 0x231   :  { %1704 = vst [vmem:[#allocation5] sm:$0xff] %v1646_v34  ;;  %v932_v36 = vpop.f32.mrf.mxu2  ;;  %v981_v58 = vpop.f32.mrf.mxu3  ;;  %v1161_v40 = vmax.f32 %v1159_v26, %v1160_v39  ;;  %v1168_v41 = vmax.f32 %v1166_v28, %v1167_v50 }
 0x232   :  { %1705 = vst [vmem:[#allocation5 + $0x8] sm:$0xff] %v1653_v57  ;;  %v1145_v9 = vmax.f32 %v930_v35, %v932_v36  ;;  %v1152_v37 = vmax.f32 %v979_v4, %v981_v58 }
 0x233   :  { %v1162_v16 = vrot.slane %v1161_v40, 2  ;;  %v1169_v51 = vrot.slane %v1168_v41, 2 }
 0x234   :  { %v1033_v49 = vpop.f32.mrf.mxu0  ;;  %v1082_v38 = vpop.f32.mrf.mxu1  ;;  %v1146_v44 = vrot.slane %v1145_v9, 4  ;;  %v1153_v45 = vrot.slane %v1152_v37, 4 }
 0x235   :  { %v1163_v61 = vmax.f32 %v1161_v40, %v1162_v16  ;;  %v1170_v63 = vmax.f32 %v1168_v41, %v1169_v51 }
 0x236   :  { %v1147_v14 = vmax.f32 %v1145_v9, %v1146_v44  ;;  %v1154_v55 = vmax.f32 %v1152_v37, %v1153_v45 }
 0x237   :  { %v1164_v13 = vrot.slane %v1163_v61, 1  ;;  %v1171_v12 = vrot.slane %v1170_v63, 1 }
 0x238   :  { %v1148_v5 = vrot.slane %v1147_v14, 2  ;;  %v1155_v6 = vrot.slane %v1154_v55, 2 }
 0x239   :  { %v935_v42 = vpop.f32.mrf.mxu2  ;;  %v984_v43 = vpop.f32.mrf.mxu3  ;;  %v1165_v24 = vmax.f32 %v1163_v61, %v1164_v13  ;;  %v1172_v25 = vmax.f32 %v1170_v63, %v1171_v12 }
 0x23a   :  { %v1149_v18 = vmax.f32 %v1147_v14, %v1148_v5  ;;  %v1156_v15 = vmax.f32 %v1154_v55, %v1155_v6 }
 0x23c   :  { %v1035_v47 = vpop.f32.mrf.mxu0  ;;  %v1084_v48 = vpop.f32.mrf.mxu1  ;;  %v1150_v30 = vrot.slane %v1149_v18, 1  ;;  %v1157_v31 = vrot.slane %v1156_v15, 1 }
 0x23d   :  { %v1215_v52 = vmax.f32 %v1033_v49, %v1035_v47  ;;  %v1222_v54 = vmax.f32 %v1082_v38, %v1084_v48 }
 0x23e   :  { %v1151_v39 = vmax.f32 %v1149_v18, %v1150_v30  ;;  %v1158_v50 = vmax.f32 %v1156_v15, %v1157_v31 }
 0x23f   :  { %v1216_v59 = vrot.slane %v1215_v52, 4  ;;  %v1223_v60 = vrot.slane %v1222_v54, 4 }
 0x241   :  { %v1217_v0 = vmax.f32 %v1215_v52, %v1216_v59  ;;  %v1224_v1 = vmax.f32 %v1222_v54, %v1223_v60  ;;  %v937_v2 = vpop.f32.mrf.mxu2  ;;  %v986_v3 = vpop.f32.mrf.mxu3 }
 0x242   :  { %v1201_v7 = vmax.f32 %v935_v42, %v937_v2  ;;  %v1208_v8 = vmax.f32 %v984_v43, %v986_v3 }
 0x243   :  { %v1218_v27 = vrot.slane %v1217_v0, 2  ;;  %v1225_v10 = vrot.slane %v1224_v1, 2 }
 0x244   :  { %v1202_v46 = vrot.slane %v1201_v7, 4  ;;  %v1209_v11 = vrot.slane %v1208_v8, 4  ;;  %v1038_v35 = vpop.f32.mrf.mxu0  ;;  %v1087_v4 = vpop.f32.mrf.mxu1 }
 0x245   :  { %v1219_v53 = vmax.f32 %v1217_v0, %v1218_v27  ;;  %v1226_v56 = vmax.f32 %v1224_v1, %v1225_v10 }
 0x246   :  { %v1203_v17 = vmax.f32 %v1201_v7, %v1202_v46  ;;  %v1210_v19 = vmax.f32 %v1208_v8, %v1209_v11 }
 0x247   :  { %v1220_v20 = vrot.slane %v1219_v53, 1  ;;  %v1227_v21 = vrot.slane %v1226_v56, 1 }
 0x248   :  { %v1204_v22 = vrot.slane %v1203_v17, 2  ;;  %v1211_v23 = vrot.slane %v1210_v19, 2 }
 0x249   :  { %v1221_v26 = vmax.f32 %v1219_v53, %v1220_v20  ;;  %v1228_v28 = vmax.f32 %v1226_v56, %v1227_v21  ;;  %v940_v29 = vpop.f32.mrf.mxu2  ;;  %v989_v62 = vpop.f32.mrf.mxu3 }
 0x24a   :  { %v1205_v32 = vmax.f32 %v1203_v17, %v1204_v22  ;;  %v1212_v33 = vmax.f32 %v1210_v19, %v1211_v23 }
 0x24b   :  { %v1682_v34 = vsel %vm1633_vm4, %v1221_v26, %v1165_v24  ;;  %v1689_v57 = vsel %vm1633_vm4, %v1228_v28, %v1172_v25 }
 0x24c   :  { %v1206_v36 = vrot.slane %v1205_v32, 1  ;;  %v1213_v58 = vrot.slane %v1212_v33, 1  ;;  %v1040_v9 = vpop.f32.mrf.mxu0  ;;  %v1089_v37 = vpop.f32.mrf.mxu1 }
 0x24d   :  { %v1271_v49 = vmax.f32 %v1038_v35, %v1040_v9  ;;  %v1278_v38 = vmax.f32 %v1087_v4, %v1089_v37 }
 0x24e   :  { %v1207_v40 = vmax.f32 %v1205_v32, %v1206_v36  ;;  %v1214_v41 = vmax.f32 %v1212_v33, %v1213_v58 }
 0x24f   :  { %v1272_v42 = vrot.slane %v1271_v49, 4  ;;  %v1279_v43 = vrot.slane %v1278_v38, 4 }
 0x250   :  { %v1668_v44 = vsel %vm1633_vm4, %v1207_v40, %v1151_v39  ;;  %v1675_v45 = vsel %vm1633_vm4, %v1214_v41, %v1158_v50 }
 0x251   :  { %v1273_v47 = vmax.f32 %v1271_v49, %v1272_v42  ;;  %v1280_v48 = vmax.f32 %v1278_v38, %v1279_v43  ;;  %v942_v16 = vpop.f32.mrf.mxu2  ;;  %v991_v51 = vpop.f32.mrf.mxu3 }
 0x252   :  { %v1257_v52 = vmax.f32 %v940_v29, %v942_v16  ;;  %v1264_v54 = vmax.f32 %v989_v62, %v991_v51 }
 0x253   :  { %v1274_v14 = vrot.slane %v1273_v47, 2  ;;  %v1281_v55 = vrot.slane %v1280_v48, 2 }
 0x254   :  { %v1258_v59 = vrot.slane %v1257_v52, 4  ;;  %v1265_v60 = vrot.slane %v1264_v54, 4  ;;  %v1043_v61 = vpop.f32.mrf.mxu0  ;;  %v2644_v4 = vpop.f32.mrf.mxu1 }
 0x255   :  { %v1275_v63 = vmax.f32 %v1273_v47, %v1274_v14  ;;  %v1282_v0 = vmax.f32 %v1280_v48, %v1281_v55 }
 0x256   :  { %v1259_v1 = vmax.f32 %v1257_v52, %v1258_v59  ;;  %v1266_v2 = vmax.f32 %v1264_v54, %v1265_v60 }
 0x257   :  { %v1276_v3 = vrot.slane %v1275_v63, 1  ;;  %v1283_v5 = vrot.slane %v1282_v0, 1 }
 0x258   :  { %v1260_v6 = vrot.slane %v1259_v1, 2  ;;  %v1267_v7 = vrot.slane %v1266_v2, 2 }
 0x259   :  { %v1277_v8 = vmax.f32 %v1275_v63, %v1276_v3  ;;  %v1284_v27 = vmax.f32 %v1282_v0, %v1283_v5  ;;  %v945_v10 = vpop.f32.mrf.mxu2  ;;  %v994_v46 = vpop.f32.mrf.mxu3 }
 0x25a   :  { %v1261_v11 = vmax.f32 %v1259_v1, %v1260_v6  ;;  %v1268_v35 = vmax.f32 %v1266_v2, %v1267_v7 }
 0x25b   :  { %v1683_v13 = vsel %vm1635_vm5, %v1277_v8, %v1682_v34  ;;  %v2648_v12 = vsel %vm1635_vm5, %v1284_v27, %v1689_v57 }
 0x25c   :  { %v1262_v53 = vrot.slane %v1261_v11, 1  ;;  %v1269_v56 = vrot.slane %v1268_v35, 1  ;;  %v1045_v18 = vpop.f32.mrf.mxu0  ;;  %v2652_v62 = vpop.f32.mrf.mxu1 }
 0x25d   :  { %v1327_v15 = vmax.f32 %v1043_v61, %v1045_v18 }
 0x25e   :  { %v1263_v17 = vmax.f32 %v1261_v11, %v1262_v53  ;;  %v1270_v19 = vmax.f32 %v1268_v35, %v1269_v56 }
 0x25f   :  { %v1328_v20 = vrot.slane %v1327_v15, 4 }
 0x260   :  { %v1669_v21 = vsel %vm1635_vm5, %v1263_v17, %v1668_v44  ;;  %v1676_v22 = vsel %vm1635_vm5, %v1270_v19, %v1675_v45 }
 0x261   :  { %v1329_v23 = vmax.f32 %v1327_v15, %v1328_v20  ;;  %v947_v24 = vpop.f32.mrf.mxu2  ;;  %v996_v25 = vpop.f32.mrf.mxu3 }
 0x262   :  { %v1313_v26 = vmax.f32 %v945_v10, %v947_v24  ;;  %v1320_v28 = vmax.f32 %v994_v46, %v996_v25 }
 0x263   :  { %v1330_v29 = vrot.slane %v1329_v23, 2 }
 0x264   :  { %v1314_v30 = vrot.slane %v1313_v26, 4  ;;  %v1321_v31 = vrot.slane %v1320_v28, 4  ;;  %v1048_v32 = vpop.f32.mrf.mxu0  ;;  %v1097_v47 = vpop.f32.mrf.mxu1 }
 0x265   :  { %v1331_v33 = vmax.f32 %v1329_v23, %v1330_v29 }
 0x266   :  { %v1315_v34 = vmax.f32 %v1313_v26, %v1314_v30  ;;  %v1322_v57 = vmax.f32 %v1320_v28, %v1321_v31 }
 0x267   :  { %v1332_v36 = vrot.slane %v1331_v33, 1 }
 0x268   :  { %v1316_v58 = vrot.slane %v1315_v34, 2  ;;  %v1323_v9 = vrot.slane %v1322_v57, 2 }
 0x269   :  { %v1333_v37 = vmax.f32 %v1331_v33, %v1332_v36  ;;  %v950_v49 = vpop.f32.mrf.mxu2  ;;  %v999_v38 = vpop.f32.mrf.mxu3 }
 0x26a   :  { %v1317_v39 = vmax.f32 %v1315_v34, %v1316_v58  ;;  %v1324_v50 = vmax.f32 %v1322_v57, %v1323_v9 }
 0x26b   :  { %v2655_v40 = vsel %vm1637_vm6, %v1333_v37, %v1683_v13 }
 0x26c   :  { %v1318_v41 = vrot.slane %v1317_v39, 1  ;;  %v1325_v42 = vrot.slane %v1324_v50, 1  ;;  %v1050_v43 = vpop.f32.mrf.mxu0  ;;  %v1099_v14 = vpop.f32.mrf.mxu1 }
 0x26d   :  { %v1383_v1 = vmax.f32 %v1048_v32, %v1050_v43  ;;  %v1334_v32 = vmax.f32 %v2644_v4, %v2652_v62  ;;  %v1390_v36 = vmax.f32 %v1097_v47, %v1099_v14 }
 0x26e   :  { %v1319_v44 = vmax.f32 %v1317_v39, %v1318_v41  ;;  %v1326_v45 = vmax.f32 %v1324_v50, %v1325_v42 }
 0x26f   :  { %v1384_v3 = vrot.slane %v1383_v1, 4  ;;  %v1335_v42 = vrot.slane %v1334_v32, 4 }
 0x270   :  { %v2658_v48 = vsel %vm1637_vm6, %v1319_v44, %v1669_v21  ;;  %v2661_v16 = vsel %vm1637_vm6, %v1326_v45, %v1676_v22 }
 0x271   :  { %v952_v51 = vpop.f32.mrf.mxu2  ;;  %v1001_v52 = vpop.f32.mrf.mxu3  ;;  %v1385_v7 = vmax.f32 %v1383_v1, %v1384_v3 }
 0x272   :  { %v1369_v35 = vmax.f32 %v950_v49, %v952_v51  ;;  %v1376_v13 = vmax.f32 %v999_v38, %v1001_v52  ;;  %v1391_v51 = vrot.slane %v1390_v36, 4 }
 0x273   :  { %v1386_v11 = vrot.slane %v1385_v7, 2 }
 0x274   :  { %v1053_v54 = vpop.f32.mrf.mxu0  ;;  %v2663_v0 = vpop.f32.mrf.mxu1  ;;  %v1370_v23 = vrot.slane %v1369_v35, 4  ;;  %v1377_v24 = vrot.slane %v1376_v13, 4  ;;  %v2671_v3 = vmax.f32 %v1390_v36, %v1391_v51 }
 0x275   :  { %v1387_v22 = vmax.f32 %v1385_v7, %v1386_v11 }
 0x276   :  { %v1371_v58 = vmax.f32 %v1369_v35, %v1370_v23  ;;  %v1378_v9 = vmax.f32 %v1376_v13, %v1377_v24 }
 0x277   :  { %v1388_v57 = vrot.slane %v1387_v22, 1 }
 0x278   :  { %v1372_v52 = vrot.slane %v1371_v58, 2 }
 0x279   :  { %v955_v55 = vpop.f32.mrf.mxu2  ;;  %v1004_v59 = vpop.f32.mrf.mxu3  ;;  %v1389_v45 = vmax.f32 %v1387_v22, %v1388_v57 }
 0x27c   :  { %v1055_v60 = vpop.f32.mrf.mxu0  ;;  %v1104_v8 = vpop.f32.mrf.mxu1 }
 0x27d   :  { %v1439_v10 = vmax.f32 %v1053_v54, %v1055_v60  ;;  %v1379_v54 = vrot.slane %v1378_v9, 2  ;;  %v2667_v60 = vmax.f32 %v1334_v32, %v1335_v42 }
 0x27f   :  { %v1440_v53 = vrot.slane %v1439_v10, 4 }
 0x281   :  { %v957_v61 = vpop.f32.mrf.mxu2  ;;  %v1006_v63 = vpop.f32.mrf.mxu3  ;;  %v1441_v26 = vmax.f32 %v1439_v10, %v1440_v53  ;;  %v1446_v10 = vmax.f32 %v2663_v0, %v1104_v8 }
 0x282   :  { %v1425_v56 = vmax.f32 %v955_v55, %v957_v61  ;;  %v1432_v17 = vmax.f32 %v1004_v59, %v1006_v63 }
 0x283   :  { %v1442_v37 = vrot.slane %v1441_v26, 2 }
 0x284   :  { %v1058_v2 = vpop.f32.mrf.mxu0  ;;  %v1426_v28 = vrot.slane %v1425_v56, 4  ;;  %v1433_v29 = vrot.slane %v1432_v17, 4  ;;  %v1107_v30 = vpop.f32.mrf.mxu1 }
 0x285   :  { %v1443_v62 = vmax.f32 %v1441_v26, %v1442_v37  ;;  %v1447_v26 = vrot.slane %v1446_v10, 4 }
 0x286   :  { %v1427_v49 = vmax.f32 %v1425_v56, %v1426_v28  ;;  %v1434_v50 = vmax.f32 %v1432_v17, %v1433_v29 }
 0x288   :  { %v1428_v55 = vrot.slane %v1427_v49, 2  ;;  %v1435_v47 = vrot.slane %v1434_v50, 2 }
 0x289   :  { %v960_v5 = vpop.f32.mrf.mxu2  ;;  %v1009_v6 = vpop.f32.mrf.mxu3 }
 0x28a   :  { %v1436_v53 = vmax.f32 %v1434_v50, %v1435_v47  ;;  %v1393_v47 = vrot.slane %v2671_v3, 2 }
 0x28c   :  { %v1060_v27 = vpop.f32.mrf.mxu0  ;;  %v1109_v7 = vpop.f32.mrf.mxu1  ;;  %v1437_v8 = vrot.slane %v1436_v53, 1 }
 0x28d   :  { %v1495_v46 = vmax.f32 %v1058_v2, %v1060_v27  ;;  %v1685_v2 = vsel %vm1639_vm7, %v1389_v45, %v2655_v40  ;;  %v1444_v27 = vrot.slane %v1443_v62, 1  ;;  %v1502_v17 = vmax.f32 %v1107_v30, %v1109_v7 }
 0x28e   :  { %v1438_v42 = vmax.f32 %v1436_v53, %v1437_v8 }
 0x28f   :  { %v1496_v19 = vrot.slane %v1495_v46, 4 }
 0x291   :  { %v962_v18 = vpop.f32.mrf.mxu2  ;;  %v1011_v15 = vpop.f32.mrf.mxu3  ;;  %v1497_v31 = vmax.f32 %v1495_v46, %v1496_v19  ;;  %v1429_v46 = vmax.f32 %v1427_v49, %v1428_v55 }
 0x292   :  { %v1481_v20 = vmax.f32 %v960_v5, %v962_v18  ;;  %v1488_v21 = vmax.f32 %v1009_v6, %v1011_v15  ;;  %v1373_v5 = vmax.f32 %v1371_v58, %v1372_v52  ;;  %v1380_v6 = vmax.f32 %v1378_v9, %v1379_v54 }
 0x293   :  { %v1498_v41 = vrot.slane %v1497_v31, 2  ;;  %v1430_v28 = vrot.slane %v1429_v46, 1 }
 0x294   :  { %v1063_v25 = vpop.f32.mrf.mxu0  ;;  %v1482_v33 = vrot.slane %v1481_v20, 4  ;;  %v1489_v34 = vrot.slane %v1488_v21, 4  ;;  %v1381_v22 = vrot.slane %v1380_v6, 1 }
 0x295   :  { %v1499_v14 = vmax.f32 %v1497_v31, %v1498_v41 }
 0x296   :  { %v1483_v43 = vmax.f32 %v1481_v20, %v1482_v33  ;;  %v1490_v44 = vmax.f32 %v1488_v21, %v1489_v34  ;;  %v1374_v21 = vrot.slane %v1373_v5, 1  ;;  %v1503_v33 = vrot.slane %v1502_v17, 4 }
 0x297   :  { %v1500_v56 = vrot.slane %v1499_v14, 1  ;;  %v1382_v58 = vmax.f32 %v1380_v6, %v1381_v22 }
 0x298   :  { %v1484_v61 = vrot.slane %v1483_v43, 2  ;;  %v1491_v63 = vrot.slane %v1490_v44, 2  ;;  %v1375_v30 = vmax.f32 %v1373_v5, %v1374_v21  ;;  %v1504_v51 = vmax.f32 %v1502_v17, %v1503_v33 }
 0x299   :  { %v965_v38 = vpop.f32.mrf.mxu2  ;;  %v1014_v39 = vpop.f32.mrf.mxu3  ;;  %v1501_v29 = vmax.f32 %v1499_v14, %v1500_v56 }
 0x29a   :  { %v1485_v19 = vmax.f32 %v1483_v43, %v1484_v61  ;;  %v1492_v20 = vmax.f32 %v1490_v44, %v1491_v63  ;;  %v1671_v14 = vsel %vm1639_vm7, %v1375_v30, %v2658_v48  ;;  %v1678_v61 = vsel %vm1639_vm7, %v1382_v58, %v2661_v16 }
 0x29b   :  { %v1505_v7 = vrot.slane %v1504_v51, 2  ;;  %v1394_v16 = vmax.f32 %v2671_v3, %v1393_v47 }
 0x29c   :  { %v1065_v4 = vpop.f32.mrf.mxu0  ;;  %v1486_v34 = vrot.slane %v1485_v19, 1  ;;  %v1493_v57 = vrot.slane %v1492_v20, 1 }
 0x29d   :  { %v1551_v59 = vmax.f32 %v1063_v25, %v1065_v4  ;;  %v1445_v25 = vmax.f32 %v1443_v62, %v1444_v27  ;;  %v1337_v62 = vrot.slane %v2667_v60, 2  ;;  %v1506_v56 = vmax.f32 %v1504_v51, %v1505_v7 }
 0x29e   :  { %v1487_v52 = vmax.f32 %v1485_v19, %v1486_v34  ;;  %v1494_v54 = vmax.f32 %v1492_v20, %v1493_v57  ;;  %v1395_v17 = vrot.slane %v1394_v16, 1 }
 0x29f   :  { %v1552_v1 = vrot.slane %v1551_v59, 4  ;;  %v1686_v49 = vsel %vm1641_vm8, %v1445_v25, %v1685_v2  ;;  %v1679_v2 = vsel %vm1641_vm8, %v1438_v42, %v1678_v61 }
 0x2a0   :  { %v1687_v43 = vsel %vm1643_vm9, %v1501_v29, %v1686_v49  ;;  %v1396_v22 = vmax.f32 %v1394_v16, %v1395_v17 }
 0x2a1   :  { %v1553_v11 = vmax.f32 %v1551_v59, %v1552_v1  ;;  %v967_v35 = vpop.f32.mrf.mxu2  ;;  %v1016_v13 = vpop.f32.mrf.mxu3 }
 0x2a2   :  { %v1537_v18 = vmax.f32 %v965_v38, %v967_v35  ;;  %v1544_v15 = vmax.f32 %v1014_v39, %v1016_v13  ;;  %v1448_v38 = vmax.f32 %v1446_v10, %v1447_v26  ;;  %v1431_v39 = vmax.f32 %v1429_v46, %v1430_v28 }
 0x2a3   :  { %v1554_v40 = vrot.slane %v1553_v11, 2  ;;  %v1680_v10 = vsel %vm1643_vm9, %v1494_v54, %v1679_v2  ;;  %v1338_v46 = vmax.f32 %v2667_v60, %v1337_v62 }
 0x2a4   :  { %v1538_v23 = vrot.slane %v1537_v18, 4  ;;  %v1545_v24 = vrot.slane %v1544_v15, 4  ;;  %v1449_v63 = vrot.slane %v1448_v38, 2  ;;  %v1672_v1 = vsel %vm1641_vm8, %v1431_v39, %v1671_v14 }
 0x2a5   :  { %v1555_v0 = vmax.f32 %v1553_v11, %v1554_v40  ;;  %v1673_v27 = vsel %vm1643_vm9, %v1487_v52, %v1672_v1  ;;  %v1507_v40 = vrot.slane %v1506_v56, 1 }
 0x2a6   :  { %v1539_v31 = vmax.f32 %v1537_v18, %v1538_v23  ;;  %v1546_v32 = vmax.f32 %v1544_v15, %v1545_v24  ;;  %v1450_v13 = vmax.f32 %v1448_v38, %v1449_v63  ;;  %v1339_v18 = vrot.slane %v1338_v46, 1 }
 0x2a7   :  { %v1556_v36 = vrot.slane %v1555_v0, 1  ;;  %v1508_v25 = vmax.f32 %v1506_v56, %v1507_v40 }
 0x2a8   :  { %v1540_v9 = vrot.slane %v1539_v31, 2  ;;  %v1547_v37 = vrot.slane %v1546_v32, 2  ;;  %v1451_v19 = vrot.slane %v1450_v13, 1  ;;  %v1340_v21 = vmax.f32 %v1338_v46, %v1339_v18 }
 0x2a9   :  { %v1557_v50 = vmax.f32 %v1555_v0, %v1556_v36  ;;  %v1112_v41 = vpop.f32.mrf.mxu3 }
 0x2aa   :  { %v1541_v44 = vmax.f32 %v1539_v31, %v1540_v9  ;;  %v1548_v45 = vmax.f32 %v1546_v32, %v1547_v37  ;;  %v1452_v23 = vmax.f32 %v1450_v13, %v1451_v19  ;;  %v1691_v3 = vsel %vm1637_vm6, %v1340_v21, %v2648_v12 }
 0x2ab   :  { %v1688_v4 = vsel %vm1645_vm10, %v1557_v50, %v1687_v43  ;;  %v1692_v28 = vsel %vm1639_vm7, %v1396_v22, %v1691_v3 }
 0x2ac   :  { %1710 = vst [vmem:[#allocation5 + $0x30] sm:$0xff] %v1688_v4  ;;  %v1542_v55 = vrot.slane %v1541_v44, 1  ;;  %v1549_v59 = vrot.slane %v1548_v45, 1  ;;  %v1693_v0 = vsel %vm1641_vm8, %v1452_v23, %v1692_v28 }
 0x2ad   :  { %v1694_v29 = vsel %vm1643_vm9, %v1508_v25, %v1693_v0 }
 0x2ae   :  { %v1543_v5 = vmax.f32 %v1541_v44, %v1542_v55  ;;  %v1550_v6 = vmax.f32 %v1548_v45, %v1549_v59 }
 0x2b0   :  { %v1674_v11 = vsel %vm1645_vm10, %v1543_v5, %v1673_v27  ;;  %v1681_v48 = vsel %vm1645_vm10, %v1550_v6, %v1680_v10 }
 0x2b1   :  { %1708 = vst [vmem:[#allocation5 + $0x20] sm:$0xff] %v1674_v11  ;;  %v1114_v35 = vpop.f32.mrf.mxu3 }
 0x2b2   :  { %1709 = vst [vmem:[#allocation5 + $0x28] sm:$0xff] %v1681_v48  ;;  %v1558_v53 = vmax.f32 %v1112_v41, %v1114_v35 }
 0x2b4   :  { %v1559_v15 = vrot.slane %v1558_v53, 4 }
 0x2b6   :  { %v1560_v20 = vmax.f32 %v1558_v53, %v1559_v15 }
 0x2b8   :  { %v1561_v60 = vrot.slane %v1560_v20, 2 }
 0x2ba   :  { %v1562_v24 = vmax.f32 %v1560_v20, %v1561_v60 }
 0x2bc   :  { %v1563_v26 = vrot.slane %v1562_v24, 1 }
 0x2be   :  { %v1564_v8 = vmax.f32 %v1562_v24, %v1563_v26 }
 0x2c0   :  { %v1695_v31 = vsel %vm1645_vm10, %v1564_v8, %v1694_v29 }
 0x2c1   :  { %1711 = vst [vmem:[#allocation5 + $0x38] sm:$0xff] %v1695_v31 }
 0x2c2   :  { %1885 = dma.vmem_to_hbm [thread:$0]  %s1881_s29, 1024, %s1883_s7, [#allocation4]  }
 0x2c3   :  { %2358 = dma.done.wait [#allocation4], 1024  }
 0x2c4   :  { %2359 = vsyncadd [#allocation4], 4294966272 }
 0x2c5   :  { %1890 = vsyncpa [#allocation3], 1 }
 0x2c6   :  { %1891 = vsyncpa [#allocation4], 1 }

</bundles_post_ra>
